<compile_context>
chip_gen: v6e
topology: v6e:2x2x1
jax: 0.10.0
libtpu: 0.0.40
codegen_flags: <defaults>
</compile_context>

<pallas_src>
import functools

import jax
import jax.numpy as jnp
from jax.experimental import pallas as pl
from jax.experimental.pallas import tpu as pltpu


def _round_up(v, m):
    return ((v + m - 1) // m) * m


# ------------------------------ fused kernel --------------------------------
def _bottleneck_kernel(x_ref, w1_ref, b1_ref, w2_ref, b2_ref, w3_ref, b3_ref,
                       o_ref, y1_scr, *, H, W, d_start, s_rows):
    """Fused Bottleneck for one image per grid step; whole-slab matmuls.

    Layout: pixels on the sublane axis, channels on the lane axis.
      x_ref  : (1, H*W, Cin)   bf16 flattened NHWC activations
      w1_ref : (Cin, Cw)       bf16, BN1 folded
      b1_ref : (1, Cw)         f32
      w2_ref : (9, Cw, Cw)     bf16, tap index ky*3+kx, BN2 folded
      b2_ref : (1, Cw)         f32
      w3_ref : (Cw, Cout)      bf16, BN3 folded
      b3_ref : (1, Cout)       f32
      o_ref  : (1, H*W, Cout)  bf16
      y1_scr : (s_rows, Cw)    f32; rows [0, d_start) and [d_start+H*W, s_rows)
               are zero halo, rows [d_start, d_start+H*W) hold conv1 output.
    """
    f32 = jnp.float32
    bf16 = jnp.bfloat16
    HW = H * W
    Cw = w1_ref.shape[1]

    # Zero halo / safety rows (cheap; done every step -- see header comment).
    y1_scr[0:d_start, :] = jnp.zeros((d_start, Cw), f32)
    y1_scr[d_start + HW:s_rows, :] = jnp.zeros((s_rows - d_start - HW, Cw), f32)

    x = x_ref[0]                                                    # (HW, Cin)

    # ---- conv1 (1x1) + bn1 + relu : one whole-slab MXU matmul ----
    y1 = jnp.maximum(
        jnp.dot(x, w1_ref[...], preferred_element_type=f32) + b1_ref[...], 0.0)
    y1_scr[d_start:d_start + HW, :] = y1                            # one store

    # ---- conv2 (3x3, stride 1, pad 1) + bn2 + relu ----
    # 9 whole-slab shifted matmuls over the flat scratch.  Row shifts (+-W)
    # read the zeroed halo rows; column shifts (+-1) wrap across row
    # boundaries and are corrected by masking the per-kx partial sums
    # (the true contribution at those positions is the zero padding).
    col = jax.lax.broadcasted_iota(jnp.int32, (HW, 1), 0) % W

    def kx_partial(kx):
        acc = jnp.zeros((HW, Cw), f32)
        for ky in range(3):
            start = d_start + (ky - 1) * W + (kx - 1)
            src = y1_scr[pl.ds(start, HW), :].astype(bf16)
            acc = acc + jnp.dot(src, w2_ref[ky * 3 + kx],
                                preferred_element_type=f32)
        return acc

    acc = kx_partial(1)
    acc = acc + jnp.where(col > 0, kx_partial(0), 0.0)
    acc = acc + jnp.where(col < W - 1, kx_partial(2), 0.0)
    y2 = jnp.maximum(acc + b2_ref[...], 0.0).astype(bf16)           # (HW, Cw)

    # ---- conv3 (1x1) + bn3, residual add, final relu : one matmul + store ----
    y3 = jnp.dot(y2, w3_ref[...], preferred_element_type=f32) + b3_ref[...]
    out = jnp.maximum(y3 + x.astype(f32), 0.0)                      # (HW, Cout)
    o_ref[0] = out.astype(o_ref.dtype)


# -------------------------------- wrapper ------------------------------------
@functools.partial(jax.jit, static_argnames=("eps",))
def bottleneck_forward(x, params, eps=1e-5):
    """x: (N, Cin, H, W) float32.  params: torch-layout conv weights + BN stats."""
    N, Cin, H, W = x.shape
    w1t = params["w1"]          # (Cw, Cin, 1, 1)   OIHW
    w2t = params["w2"]          # (Cw, Cw, 3, 3)
    w3t = params["w3"]          # (Cout, Cw, 1, 1)
    Cw = w1t.shape[0]
    Cout = w3t.shape[0]
    assert Cout == Cin, "downsample=None requires expansion*planes == inplanes"

    f32, bf16 = jnp.float32, jnp.bfloat16

    # ---- fold inference-mode BN into conv weights / biases ----
    s1 = params["bn1_g"] / jnp.sqrt(params["bn1_v"] + eps)
    w1f = (w1t[:, :, 0, 0] * s1[:, None]).T.astype(bf16)             # (Cin, Cw)
    b1f = (params["bn1_b"] - params["bn1_m"] * s1)[None, :].astype(f32)

    s2 = params["bn2_g"] / jnp.sqrt(params["bn2_v"] + eps)
    w2f = (jnp.transpose(w2t, (2, 3, 1, 0)).reshape(9, Cw, Cw)
           * s2[None, None, :]).astype(bf16)                         # (9,Cw,Cw)
    b2f = (params["bn2_b"] - params["bn2_m"] * s2)[None, :].astype(f32)

    s3 = params["bn3_g"] / jnp.sqrt(params["bn3_v"] + eps)
    w3f = (w3t[:, :, 0, 0] * s3[:, None]).T.astype(bf16)             # (Cw,Cout)
    b3f = (params["bn3_b"] - params["bn3_m"] * s3)[None, :].astype(f32)

    HW = H * W
    # NCHW -> flat NHWC (pixels on sublanes, channels on lanes), bf16 I/O.
    x2d = jnp.transpose(x, (0, 2, 3, 1)).reshape(N, HW, Cin).astype(bf16)

    # Scratch geometry: top halo >= W+1 rows so every shifted slab start >= 0.
    d_start = _round_up(W + 1, 8)
    s_rows = _round_up(d_start + HW + W + 1, 8)

    flops = 2 * N * HW * (Cin * Cw + 9 * Cw * Cw + Cw * Cout)
    bytes_accessed = (N * HW * (Cin + Cout) * 2
                      + (Cin * Cw + 9 * Cw * Cw + Cw * Cout) * 2
                      + (2 * Cw + Cout) * 4)

    block_bytes = (2 * (HW * Cin * 2 + HW * Cout * 2)        # dbl-buffered I/O
                   + s_rows * Cw * 4                          # scratch
                   + 2 * (Cin * Cw + 9 * Cw * Cw + Cw * Cout) * 2
                   + 2 * (2 * Cw + Cout) * 4)
    vmem_limit = int(min(100 * 2**20, max(4 * block_bytes, 16 * 2**20)))

    kernel = functools.partial(_bottleneck_kernel, H=H, W=W,
                               d_start=d_start, s_rows=s_rows)
    out2d = pl.pallas_call(
        kernel,
        out_shape=jax.ShapeDtypeStruct((N, HW, Cout), bf16),
        grid=(N,),
        in_specs=[
            pl.BlockSpec((1, HW, Cin), lambda n: (n, 0, 0)),
            pl.BlockSpec((Cin, Cw), lambda n: (0, 0)),
            pl.BlockSpec((1, Cw), lambda n: (0, 0)),
            pl.BlockSpec((9, Cw, Cw), lambda n: (0, 0, 0)),
            pl.BlockSpec((1, Cw), lambda n: (0, 0)),
            pl.BlockSpec((Cw, Cout), lambda n: (0, 0)),
            pl.BlockSpec((1, Cout), lambda n: (0, 0)),
        ],
        out_specs=pl.BlockSpec((1, HW, Cout), lambda n: (n, 0, 0)),
        scratch_shapes=[pltpu.VMEM((s_rows, Cw), f32)],
        compiler_params=pltpu.CompilerParams(
            dimension_semantics=("parallel",),
            vmem_limit_bytes=vmem_limit),
        cost_estimate=pl.CostEstimate(flops=flops, transcendentals=0,
                                      bytes_accessed=bytes_accessed),
    )(x2d, w1f, b1f, w2f, b2f, w3f, b3f)

    out = out2d.reshape(N, H, W, Cout).astype(f32)
    return jnp.transpose(out, (0, 3, 1, 2))                          # NCHW


# --------------------------- pure-JAX reference ------------------------------
def _ref_bottleneck(x, params, eps=1e-5):
    dn = ("NCHW", "OIHW", "NCHW")
    hp = jax.lax.Precision.HIGHEST

    def bn(y, pfx):
        g, b, m, v = (params[pfx + s] for s in ("_g", "_b", "_m", "_v"))
        s = g / jnp.sqrt(v + eps)
        return ((y - m[None, :, None, None]) * s[None, :, None, None]
                + b[None, :, None, None])

    y = jax.lax.conv_general_dilated(x, params["w1"], (1, 1), "VALID",
                                     dimension_numbers=dn, precision=hp)
    y = jax.nn.relu(bn(y, "bn1"))
    y = jax.lax.conv_general_dilated(y, params["w2"], (1, 1), ((1, 1), (1, 1)),
                                     dimension_numbers=dn, precision=hp)
    y = jax.nn.relu(bn(y, "bn2"))
    y = jax.lax.conv_general_dilated(y, params["w3"], (1, 1), "VALID",
                                     dimension_numbers=dn, precision=hp)
    y = bn(y, "bn3")
    return jax.nn.relu(y + x)


if __name__ == "__main__":
    key = jax.random.PRNGKey(0)
    keys = jax.random.split(key, 16)

    # Bottleneck(inplanes=16, planes=4): width=4, out channels = 4*4 = 16
    N, inplanes, planes, H, W = 2, 16, 4, 16, 16
    width = planes
    Cout = planes * 4

    def nrm(k, shape, scale=1.0):
        return scale * jax.random.normal(k, shape, dtype=jnp.float32)

    def uni(k, shape):
        return jax.random.uniform(k, shape, jnp.float32, 0.5, 1.5)

    params = {
        "w1": nrm(keys[0], (width, inplanes, 1, 1), 0.2),
        "bn1_g": uni(keys[1], (width,)),
        "bn1_b": nrm(keys[2], (width,), 0.1),
        "bn1_m": nrm(keys[3], (width,), 0.1),
        "bn1_v": uni(keys[4], (width,)),
        "w2": nrm(keys[5], (width, width, 3, 3), 0.2),
        "bn2_g": uni(keys[6], (width,)),
        "bn2_b": nrm(keys[7], (width,), 0.1),
        "bn2_m": nrm(keys[8], (width,), 0.1),
        "bn2_v": uni(keys[9], (width,)),
        "w3": nrm(keys[10], (Cout, width, 1, 1), 0.2),
        "bn3_g": uni(keys[11], (Cout,)),
        "bn3_b": nrm(keys[12], (Cout,), 0.1),
        "bn3_m": nrm(keys[13], (Cout,), 0.1),
        "bn3_v": uni(keys[14], (Cout,)),
    }
    x = nrm(keys[15], (N, inplanes, H, W), 1.0)

    out = bottleneck_forward(x, params)
    out = jax.block_until_ready(out)

    ref = _ref_bottleneck(x, params)
    ref = jax.block_until_ready(ref)

    assert out.shape == ref.shape, (out.shape, ref.shape)
    assert bool(jnp.all(jnp.isfinite(out))), "non-finite values in kernel output"
    max_diff = float(jnp.max(jnp.abs(out - ref)))
    # bf16 activations/weights with f32 accumulation vs. f32 HIGHEST reference.
    assert jnp.allclose(out, ref, rtol=5e-2, atol=5e-2), f"max diff {max_diff}"
    print("KERNEL_OK")
</pallas_src>

<mosaic_0001>
module attributes {stable_mosaic.version = 11 : i64} {
  func.func @_bottleneck_kernel(%arg0: i32, %arg1: memref<1x256x16xbf16, #tpu.memory_space<vmem>>, %arg2: memref<16x4xbf16, #tpu.memory_space<vmem>>, %arg3: memref<1x4xf32, #tpu.memory_space<vmem>>, %arg4: memref<9x4x4xbf16, #tpu.memory_space<vmem>>, %arg5: memref<1x4xf32, #tpu.memory_space<vmem>>, %arg6: memref<4x16xbf16, #tpu.memory_space<vmem>>, %arg7: memref<1x16xf32, #tpu.memory_space<vmem>>, %arg8: memref<1x256x16xbf16, #tpu.memory_space<vmem>>, %arg9: memref<304x4xf32, #tpu.memory_space<vmem>>) attributes {dimension_semantics = [#tpu.dimension_semantics<parallel>], iteration_bounds = array<i64: 2>, scalar_prefetch = 0 : i64, scratch_operands = 1 : i64, tpu.core_type = #tpu.core_type<tc>, window_params = [{transform_indices = @transform_0, window_bounds = array<i64: 1, 256, 16>}, {pipeline_mode = #tpu.pipeline_mode<synchronous>, transform_indices = @transform_1, window_bounds = array<i64: 16, 4>}, {pipeline_mode = #tpu.pipeline_mode<synchronous>, transform_indices = @transform_2, window_bounds = array<i64: 1, 4>}, {pipeline_mode = #tpu.pipeline_mode<synchronous>, transform_indices = @transform_3, window_bounds = array<i64: 9, 4, 4>}, {pipeline_mode = #tpu.pipeline_mode<synchronous>, transform_indices = @transform_4, window_bounds = array<i64: 1, 4>}, {pipeline_mode = #tpu.pipeline_mode<synchronous>, transform_indices = @transform_5, window_bounds = array<i64: 4, 16>}, {pipeline_mode = #tpu.pipeline_mode<synchronous>, transform_indices = @transform_6, window_bounds = array<i64: 1, 16>}, {transform_indices = @transform_7, window_bounds = array<i64: 1, 256, 16>}]} {
    %cst = arith.constant 0.000000e+00 : f32
    %0 = vector.broadcast %cst : f32 to vector<24x4xf32>
    %c0 = arith.constant 0 : index
    %c0_0 = arith.constant 0 : index
    %1 = vector.load %arg9[%c0, %c0_0] : memref<304x4xf32, #tpu.memory_space<vmem>>, vector<24x4xf32>
    tpu.vector_store %arg9[%c0, %c0_0], %0 {strides = array<i32>} : memref<304x4xf32, #tpu.memory_space<vmem>>, vector<24x4xf32>,
    %cst_1 = arith.constant 0.000000e+00 : f32
    %2 = vector.broadcast %cst_1 : f32 to vector<24x4xf32>
    %c280 = arith.constant 280 : index
    %c0_2 = arith.constant 0 : index
    %3 = vector.load %arg9[%c280, %c0_2] : memref<304x4xf32, #tpu.memory_space<vmem>>, vector<24x4xf32>
    tpu.vector_store %arg9[%c280, %c0_2], %2 {strides = array<i32>} : memref<304x4xf32, #tpu.memory_space<vmem>>, vector<24x4xf32>,
    %c0_3 = arith.constant 0 : index
    %c0_4 = arith.constant 0 : index
    %c0_5 = arith.constant 0 : index
    %4 = vector.load %arg1[%c0_3, %c0_4, %c0_5] : memref<1x256x16xbf16, #tpu.memory_space<vmem>>, vector<1x256x16xbf16>
    %5 = vector.shape_cast %4 : vector<1x256x16xbf16> to vector<256x16xbf16>
    %c0_6 = arith.constant 0 : index
    %c0_7 = arith.constant 0 : index
    %6 = vector.load %arg2[%c0_6, %c0_7] : memref<16x4xbf16, #tpu.memory_space<vmem>>, vector<16x4xbf16>
    %cst_8 = arith.constant dense<0.000000e+00> : vector<256x4xf32>
    %7 = tpu.matmul %5, %6, %cst_8 {dimension_numbers = #tpu.dot_dimension_numbers<[1], [0], [0], [1], [0, 0, 1, 1], [], []>} : vector<256x16xbf16>, vector<16x4xbf16>, vector<256x4xf32> -> vector<256x4xf32>
    %c0_9 = arith.constant 0 : index
    %c0_10 = arith.constant 0 : index
    %8 = vector.load %arg3[%c0_9, %c0_10] : memref<1x4xf32, #tpu.memory_space<vmem>>, vector<1x4xf32>
    %9 = vector.broadcast %8 : vector<1x4xf32> to vector<256x4xf32>
    %10 = arith.addf %7, %9 : vector<256x4xf32>
    %cst_11 = arith.constant 0.000000e+00 : f32
    %11 = vector.broadcast %cst_11 : f32 to vector<256x4xf32>
    %12 = arith.maximumf %10, %11 : vector<256x4xf32>
    %c24 = arith.constant 24 : index
    %c0_12 = arith.constant 0 : index
    %13 = vector.load %arg9[%c24, %c0_12] : memref<304x4xf32, #tpu.memory_space<vmem>>, vector<256x4xf32>
    tpu.vector_store %arg9[%c24, %c0_12], %12 {strides = array<i32>} : memref<304x4xf32, #tpu.memory_space<vmem>>, vector<256x4xf32>,
    %14 = tpu.iota {dimensions = array<i32: 0>} : vector<256x1xi32>
    %c16_i32 = arith.constant 16 : i32
    %c0_i32 = arith.constant 0 : i32
    %15 = arith.cmpi eq, %c16_i32, %c0_i32 : i32
    %c1_i32 = arith.constant 1 : i32
    %16 = arith.select %15, %c1_i32, %c16_i32 : i32
    %17 = vector.broadcast %16 : i32 to vector<256x1xi32>
    %18 = arith.remsi %14, %17 : vector<256x1xi32>
    %c0_i32_13 = arith.constant 0 : i32
    %19 = vector.broadcast %c0_i32_13 : i32 to vector<256x1xi32>
    %20 = arith.cmpi ne, %18, %19 : vector<256x1xi32>
    %c0_i32_14 = arith.constant 0 : i32
    %21 = vector.broadcast %c0_i32_14 : i32 to vector<256x1xi32>
    %22 = arith.cmpi slt, %18, %21 : vector<256x1xi32>
    %c0_i32_15 = arith.constant 0 : i32
    %23 = arith.cmpi slt, %16, %c0_i32_15 : i32
    %24 = vector.broadcast %23 : i1 to vector<256x1xi1>
    %25 = vector.broadcast %24 : vector<256x1xi1> to vector<256x1xi1>
    %26 = arith.xori %22, %25 : vector<256x1xi1>
    %27 = arith.andi %26, %20 : vector<256x1xi1>
    %28 = vector.broadcast %16 : i32 to vector<256x1xi32>
    %29 = arith.addi %18, %28 : vector<256x1xi32>
    %30 = arith.select %27, %29, %18 : vector<256x1xi1>, vector<256x1xi32>
    %cst_16 = arith.constant 0.000000e+00 : f32
    %31 = vector.broadcast %cst_16 : f32 to vector<256x4xf32>
    %c8 = arith.constant 8 : index
    %c0_17 = arith.constant 0 : index
    %32 = vector.load %arg9[%c8, %c0_17] : memref<304x4xf32, #tpu.memory_space<vmem>>, vector<256x4xf32>
    %33 = arith.truncf %32 : vector<256x4xf32> to vector<256x4xbf16>
    %c1 = arith.constant 1 : index
    %c0_18 = arith.constant 0 : index
    %c0_19 = arith.constant 0 : index
    %34 = vector.load %arg4[%c1, %c0_18, %c0_19] : memref<9x4x4xbf16, #tpu.memory_space<vmem>>, vector<1x4x4xbf16>
    %35 = vector.shape_cast %34 : vector<1x4x4xbf16> to vector<4x4xbf16>
    %cst_20 = arith.constant dense<0.000000e+00> : vector<256x4xf32>
    %36 = tpu.matmul %33, %35, %cst_20 {dimension_numbers = #tpu.dot_dimension_numbers<[1], [0], [0], [1], [0, 0, 1, 1], [], []>} : vector<256x4xbf16>, vector<4x4xbf16>, vector<256x4xf32> -> vector<256x4xf32>
    %37 = arith.addf %31, %36 : vector<256x4xf32>
    %c24_21 = arith.constant 24 : index
    %c0_22 = arith.constant 0 : index
    %38 = vector.load %arg9[%c24_21, %c0_22] : memref<304x4xf32, #tpu.memory_space<vmem>>, vector<256x4xf32>
    %39 = arith.truncf %38 : vector<256x4xf32> to vector<256x4xbf16>
    %c4 = arith.constant 4 : index
    %c0_23 = arith.constant 0 : index
    %c0_24 = arith.constant 0 : index
    %40 = vector.load %arg4[%c4, %c0_23, %c0_24] : memref<9x4x4xbf16, #tpu.memory_space<vmem>>, vector<1x4x4xbf16>
    %41 = vector.shape_cast %40 : vector<1x4x4xbf16> to vector<4x4xbf16>
    %cst_25 = arith.constant dense<0.000000e+00> : vector<256x4xf32>
    %42 = tpu.matmul %39, %41, %cst_25 {dimension_numbers = #tpu.dot_dimension_numbers<[1], [0], [0], [1], [0, 0, 1, 1], [], []>} : vector<256x4xbf16>, vector<4x4xbf16>, vector<256x4xf32> -> vector<256x4xf32>
    %43 = arith.addf %37, %42 : vector<256x4xf32>
    %c40 = arith.constant 40 : index
    %c0_26 = arith.constant 0 : index
    %44 = vector.load %arg9[%c40, %c0_26] : memref<304x4xf32, #tpu.memory_space<vmem>>, vector<256x4xf32>
    %45 = arith.truncf %44 : vector<256x4xf32> to vector<256x4xbf16>
    %c7 = arith.constant 7 : index
    %c0_27 = arith.constant 0 : index
    %c0_28 = arith.constant 0 : index
    %46 = vector.load %arg4[%c7, %c0_27, %c0_28] : memref<9x4x4xbf16, #tpu.memory_space<vmem>>, vector<1x4x4xbf16>
    %47 = vector.shape_cast %46 : vector<1x4x4xbf16> to vector<4x4xbf16>
    %cst_29 = arith.constant dense<0.000000e+00> : vector<256x4xf32>
    %48 = tpu.matmul %45, %47, %cst_29 {dimension_numbers = #tpu.dot_dimension_numbers<[1], [0], [0], [1], [0, 0, 1, 1], [], []>} : vector<256x4xbf16>, vector<4x4xbf16>, vector<256x4xf32> -> vector<256x4xf32>
    %49 = arith.addf %43, %48 : vector<256x4xf32>
    %c0_i32_30 = arith.constant 0 : i32
    %50 = vector.broadcast %c0_i32_30 : i32 to vector<256x1xi32>
    %51 = arith.cmpi sgt, %30, %50 : vector<256x1xi32>
    %cst_31 = arith.constant 0.000000e+00 : f32
    %52 = vector.broadcast %cst_31 : f32 to vector<256x4xf32>
    %c7_32 = arith.constant 7 : index
    %c0_33 = arith.constant 0 : index
    %53 = vector.load %arg9[%c7_32, %c0_33] : memref<304x4xf32, #tpu.memory_space<vmem>>, vector<256x4xf32>
    %54 = arith.truncf %53 : vector<256x4xf32> to vector<256x4xbf16>
    %c0_34 = arith.constant 0 : index
    %c0_35 = arith.constant 0 : index
    %c0_36 = arith.constant 0 : index
    %55 = vector.load %arg4[%c0_34, %c0_35, %c0_36] : memref<9x4x4xbf16, #tpu.memory_space<vmem>>, vector<1x4x4xbf16>
    %56 = vector.shape_cast %55 : vector<1x4x4xbf16> to vector<4x4xbf16>
    %cst_37 = arith.constant dense<0.000000e+00> : vector<256x4xf32>
    %57 = tpu.matmul %54, %56, %cst_37 {dimension_numbers = #tpu.dot_dimension_numbers<[1], [0], [0], [1], [0, 0, 1, 1], [], []>} : vector<256x4xbf16>, vector<4x4xbf16>, vector<256x4xf32> -> vector<256x4xf32>
    %58 = arith.addf %52, %57 : vector<256x4xf32>
    %c23 = arith.constant 23 : index
    %c0_38 = arith.constant 0 : index
    %59 = vector.load %arg9[%c23, %c0_38] : memref<304x4xf32, #tpu.memory_space<vmem>>, vector<256x4xf32>
    %60 = arith.truncf %59 : vector<256x4xf32> to vector<256x4xbf16>
    %c3 = arith.constant 3 : index
    %c0_39 = arith.constant 0 : index
    %c0_40 = arith.constant 0 : index
    %61 = vector.load %arg4[%c3, %c0_39, %c0_40] : memref<9x4x4xbf16, #tpu.memory_space<vmem>>, vector<1x4x4xbf16>
    %62 = vector.shape_cast %61 : vector<1x4x4xbf16> to vector<4x4xbf16>
    %cst_41 = arith.constant dense<0.000000e+00> : vector<256x4xf32>
    %63 = tpu.matmul %60, %62, %cst_41 {dimension_numbers = #tpu.dot_dimension_numbers<[1], [0], [0], [1], [0, 0, 1, 1], [], []>} : vector<256x4xbf16>, vector<4x4xbf16>, vector<256x4xf32> -> vector<256x4xf32>
    %64 = arith.addf %58, %63 : vector<256x4xf32>
    %c39 = arith.constant 39 : index
    %c0_42 = arith.constant 0 : index
    %65 = vector.load %arg9[%c39, %c0_42] : memref<304x4xf32, #tpu.memory_space<vmem>>, vector<256x4xf32>
    %66 = arith.truncf %65 : vector<256x4xf32> to vector<256x4xbf16>
    %c6 = arith.constant 6 : index
    %c0_43 = arith.constant 0 : index
    %c0_44 = arith.constant 0 : index
    %67 = vector.load %arg4[%c6, %c0_43, %c0_44] : memref<9x4x4xbf16, #tpu.memory_space<vmem>>, vector<1x4x4xbf16>
    %68 = vector.shape_cast %67 : vector<1x4x4xbf16> to vector<4x4xbf16>
    %cst_45 = arith.constant dense<0.000000e+00> : vector<256x4xf32>
    %69 = tpu.matmul %66, %68, %cst_45 {dimension_numbers = #tpu.dot_dimension_numbers<[1], [0], [0], [1], [0, 0, 1, 1], [], []>} : vector<256x4xbf16>, vector<4x4xbf16>, vector<256x4xf32> -> vector<256x4xf32>
    %70 = arith.addf %64, %69 : vector<256x4xf32>
    %cst_46 = arith.constant 0.000000e+00 : f32
    %71 = vector.shape_cast %51 : vector<256x1xi1> to vector<256x1xi1>
    %72 = vector.broadcast %71 : vector<256x1xi1> to vector<256x4xi1>
    %73 = vector.broadcast %cst_46 : f32 to vector<256x4xf32>
    %74 = arith.select %72, %70, %73 : vector<256x4xi1>, vector<256x4xf32>
    %75 = arith.addf %49, %74 : vector<256x4xf32>
    %c15_i32 = arith.constant 15 : i32
    %76 = vector.broadcast %c15_i32 : i32 to vector<256x1xi32>
    %77 = arith.cmpi slt, %30, %76 : vector<256x1xi32>
    %cst_47 = arith.constant 0.000000e+00 : f32
    %78 = vector.broadcast %cst_47 : f32 to vector<256x4xf32>
    %c9 = arith.constant 9 : index
    %c0_48 = arith.constant 0 : index
    %79 = vector.load %arg9[%c9, %c0_48] : memref<304x4xf32, #tpu.memory_space<vmem>>, vector<256x4xf32>
    %80 = arith.truncf %79 : vector<256x4xf32> to vector<256x4xbf16>
    %c2 = arith.constant 2 : index
    %c0_49 = arith.constant 0 : index
    %c0_50 = arith.constant 0 : index
    %81 = vector.load %arg4[%c2, %c0_49, %c0_50] : memref<9x4x4xbf16, #tpu.memory_space<vmem>>, vector<1x4x4xbf16>
    %82 = vector.shape_cast %81 : vector<1x4x4xbf16> to vector<4x4xbf16>
    %cst_51 = arith.constant dense<0.000000e+00> : vector<256x4xf32>
    %83 = tpu.matmul %80, %82, %cst_51 {dimension_numbers = #tpu.dot_dimension_numbers<[1], [0], [0], [1], [0, 0, 1, 1], [], []>} : vector<256x4xbf16>, vector<4x4xbf16>, vector<256x4xf32> -> vector<256x4xf32>
    %84 = arith.addf %78, %83 : vector<256x4xf32>
    %c25 = arith.constant 25 : index
    %c0_52 = arith.constant 0 : index
    %85 = vector.load %arg9[%c25, %c0_52] : memref<304x4xf32, #tpu.memory_space<vmem>>, vector<256x4xf32>
    %86 = arith.truncf %85 : vector<256x4xf32> to vector<256x4xbf16>
    %c5 = arith.constant 5 : index
    %c0_53 = arith.constant 0 : index
    %c0_54 = arith.constant 0 : index
    %87 = vector.load %arg4[%c5, %c0_53, %c0_54] : memref<9x4x4xbf16, #tpu.memory_space<vmem>>, vector<1x4x4xbf16>
    %88 = vector.shape_cast %87 : vector<1x4x4xbf16> to vector<4x4xbf16>
    %cst_55 = arith.constant dense<0.000000e+00> : vector<256x4xf32>
    %89 = tpu.matmul %86, %88, %cst_55 {dimension_numbers = #tpu.dot_dimension_numbers<[1], [0], [0], [1], [0, 0, 1, 1], [], []>} : vector<256x4xbf16>, vector<4x4xbf16>, vector<256x4xf32> -> vector<256x4xf32>
    %90 = arith.addf %84, %89 : vector<256x4xf32>
    %c41 = arith.constant 41 : index
    %c0_56 = arith.constant 0 : index
    %91 = vector.load %arg9[%c41, %c0_56] : memref<304x4xf32, #tpu.memory_space<vmem>>, vector<256x4xf32>
    %92 = arith.truncf %91 : vector<256x4xf32> to vector<256x4xbf16>
    %c8_57 = arith.constant 8 : index
    %c0_58 = arith.constant 0 : index
    %c0_59 = arith.constant 0 : index
    %93 = vector.load %arg4[%c8_57, %c0_58, %c0_59] : memref<9x4x4xbf16, #tpu.memory_space<vmem>>, vector<1x4x4xbf16>
    %94 = vector.shape_cast %93 : vector<1x4x4xbf16> to vector<4x4xbf16>
    %cst_60 = arith.constant dense<0.000000e+00> : vector<256x4xf32>
    %95 = tpu.matmul %92, %94, %cst_60 {dimension_numbers = #tpu.dot_dimension_numbers<[1], [0], [0], [1], [0, 0, 1, 1], [], []>} : vector<256x4xbf16>, vector<4x4xbf16>, vector<256x4xf32> -> vector<256x4xf32>
    %96 = arith.addf %90, %95 : vector<256x4xf32>
    %cst_61 = arith.constant 0.000000e+00 : f32
    %97 = vector.shape_cast %77 : vector<256x1xi1> to vector<256x1xi1>
    %98 = vector.broadcast %97 : vector<256x1xi1> to vector<256x4xi1>
    %99 = vector.broadcast %cst_61 : f32 to vector<256x4xf32>
    %100 = arith.select %98, %96, %99 : vector<256x4xi1>, vector<256x4xf32>
    %101 = arith.addf %75, %100 : vector<256x4xf32>
    %c0_62 = arith.constant 0 : index
    %c0_63 = arith.constant 0 : index
    %102 = vector.load %arg5[%c0_62, %c0_63] : memref<1x4xf32, #tpu.memory_space<vmem>>, vector<1x4xf32>
    %103 = vector.broadcast %102 : vector<1x4xf32> to vector<256x4xf32>
    %104 = arith.addf %101, %103 : vector<256x4xf32>
    %cst_64 = arith.constant 0.000000e+00 : f32
    %105 = vector.broadcast %cst_64 : f32 to vector<256x4xf32>
    %106 = arith.maximumf %104, %105 : vector<256x4xf32>
    %107 = arith.truncf %106 : vector<256x4xf32> to vector<256x4xbf16>
    %c0_65 = arith.constant 0 : index
    %c0_66 = arith.constant 0 : index
    %108 = vector.load %arg6[%c0_65, %c0_66] : memref<4x16xbf16, #tpu.memory_space<vmem>>, vector<4x16xbf16>
    %cst_67 = arith.constant dense<0.000000e+00> : vector<256x16xf32>
    %109 = tpu.matmul %107, %108, %cst_67 {dimension_numbers = #tpu.dot_dimension_numbers<[1], [0], [0], [1], [0, 0, 1, 1], [], []>} : vector<256x4xbf16>, vector<4x16xbf16>, vector<256x16xf32> -> vector<256x16xf32>
    %c0_68 = arith.constant 0 : index
    %c0_69 = arith.constant 0 : index
    %110 = vector.load %arg7[%c0_68, %c0_69] : memref<1x16xf32, #tpu.memory_space<vmem>>, vector<1x16xf32>
    %111 = vector.broadcast %110 : vector<1x16xf32> to vector<256x16xf32>
    %112 = arith.addf %109, %111 : vector<256x16xf32>
    %113 = arith.extf %5 : vector<256x16xbf16> to vector<256x16xf32>
    %114 = arith.addf %112, %113 : vector<256x16xf32>
    %cst_70 = arith.constant 0.000000e+00 : f32
    %115 = vector.broadcast %cst_70 : f32 to vector<256x16xf32>
    %116 = arith.maximumf %114, %115 : vector<256x16xf32>
    %117 = arith.truncf %116 : vector<256x16xf32> to vector<256x16xbf16>
    %c0_71 = arith.constant 0 : index
    %c0_72 = arith.constant 0 : index
    %c0_73 = arith.constant 0 : index
    %118 = vector.load %arg8[%c0_71, %c0_72, %c0_73] : memref<1x256x16xbf16, #tpu.memory_space<vmem>>, vector<1x256x16xbf16>
    %119 = vector.shape_cast %118 : vector<1x256x16xbf16> to vector<256x16xbf16>
    %120 = vector.shape_cast %117 : vector<256x16xbf16> to vector<1x256x16xbf16>
    tpu.vector_store %arg8[%c0_71, %c0_72, %c0_73], %120 {strides = array<i32>} : memref<1x256x16xbf16, #tpu.memory_space<vmem>>, vector<1x256x16xbf16>,
    return
  }
  func.func @transform_0(%arg0: i32) -> (i32, i32, i32) {
    %c0_i32 = arith.constant 0 : i32
    %c0_i32_0 = arith.constant 0 : i32
    %c0_i32_1 = arith.constant 0 : i32
    return %arg0, %c0_i32, %c0_i32_0 : i32, i32, i32
  }
  func.func @transform_1(%arg0: i32) -> (i32, i32) {
    %c0_i32 = arith.constant 0 : i32
    %c0_i32_0 = arith.constant 0 : i32
    %c0_i32_1 = arith.constant 0 : i32
    return %c0_i32, %c0_i32_0 : i32, i32
  }
  func.func @transform_2(%arg0: i32) -> (i32, i32) {
    %c0_i32 = arith.constant 0 : i32
    %c0_i32_0 = arith.constant 0 : i32
    %c0_i32_1 = arith.constant 0 : i32
    return %c0_i32, %c0_i32_0 : i32, i32
  }
  func.func @transform_3(%arg0: i32) -> (i32, i32, i32) {
    %c0_i32 = arith.constant 0 : i32
    %c0_i32_0 = arith.constant 0 : i32
    %c0_i32_1 = arith.constant 0 : i32
    %c0_i32_2 = arith.constant 0 : i32
    return %c0_i32, %c0_i32_0, %c0_i32_1 : i32, i32, i32
  }
  func.func @transform_4(%arg0: i32) -> (i32, i32) {
    %c0_i32 = arith.constant 0 : i32
    %c0_i32_0 = arith.constant 0 : i32
    %c0_i32_1 = arith.constant 0 : i32
    return %c0_i32, %c0_i32_0 : i32, i32
  }
  func.func @transform_5(%arg0: i32) -> (i32, i32) {
    %c0_i32 = arith.constant 0 : i32
    %c0_i32_0 = arith.constant 0 : i32
    %c0_i32_1 = arith.constant 0 : i32
    return %c0_i32, %c0_i32_0 : i32, i32
  }
  func.func @transform_6(%arg0: i32) -> (i32, i32) {
    %c0_i32 = arith.constant 0 : i32
    %c0_i32_0 = arith.constant 0 : i32
    %c0_i32_1 = arith.constant 0 : i32
    return %c0_i32, %c0_i32_0 : i32, i32
  }
  func.func @transform_7(%arg0: i32) -> (i32, i32, i32) {
    %c0_i32 = arith.constant 0 : i32
    %c0_i32_0 = arith.constant 0 : i32
    %c0_i32_1 = arith.constant 0 : i32
    return %arg0, %c0_i32, %c0_i32_0 : i32, i32, i32
  }
}

</mosaic_0001>

<bundles_post_ra>
// kernel: bottleneck_forward.1
= control target key start
LH: loop header
LB: loop body
LE: loop exit
PB: predicated region body
PF: predicated region fallthrough
CT: control target
= control target key end

     0   :  { %s5189_s24 = smov 0   ;;  %s6650_s0 = inlined_call_operand.vmem [shape: bf16[2,256,16], index: 0, kind: input, shape index: {}]   ;;  %s6651_s1 = inlined_call_operand.vmem [shape: bf16[16,4], index: 1, kind: input, shape index: {}]   ;;  %s6652_s2 = inlined_call_operand.vmem [shape: f32[1,4], index: 2, kind: input, shape index: {}]   ;;  %s6653_s3 = inlined_call_operand.vmem [shape: bf16[9,4,4], index: 3, kind: input, shape index: {}]   ;;  %s6654_s4 = inlined_call_operand.vmem [shape: f32[1,4], index: 4, kind: input, shape index: {}]   ;;  %s6655_s5 = inlined_call_operand.vmem [shape: bf16[4,16], index: 5, kind: input, shape index: {}]   ;;  %s6656_s6 = inlined_call_operand.vmem [shape: f32[1,16], index: 6, kind: input, shape index: {}]   ;;  %s6657_s7 = inlined_call_operand.vmem [shape: bf16[2,256,16], index: 7, kind: output, shape index: {}]  }
   0x1 LB: > { %s4228_s25 = sadd.s32 4294967295, %s5146_s24   ;;  %p4232_p0 = scmp.ge.s32.totalorder %s5146_s24, 1  ;;  %s5146_s24 = sphi %s5189_s24, %s17_s24  }
   0x2   : > { %p237_p1 = scmp.lt.s32.totalorder %s5146_s24, 3 }
   0x4   : > { %p238_p2 = pnand %p4232_p0, %p237_p1 }
   0x6   : > { %241 = sbr.rel (%p238_p2) target bundleno = 963 (0x3c3), region = 48 }
   0xb   : > { %v5091_v0 = vld [vmem:[%s6651_s1] sm:$0xff]   ;;  %p269_p3 = scmp.lt.s32.totalorder %s4228_s25, 1  ;;  %v4272_v1 = vld [vmem:[%s6653_s3 + $0x8] sm:$0x3]  ;;  %vm1208_vm0 = vcmask 1041408   ;;  %vm414_vm1 = vcmask 130048  }
   0xc   : > { %4696 = vmatprep.subr.bf16.mxu0 %v5091_v0  ;;  %5070 = vmatprep.subr.bf16.mxu1 %v5091_v0  ;;  %v1210_v8 = vsel %vm1208_vm0, %v4272_v1, 0  ;;  %vm280_vm2 = vcmask 31744   ;;  %v5148_v19 = vmov 0.0   ;;  %v4271_v20 = vld [vmem:[%s6653_s3 + $0x2] sm:$0x3] }
   0xd   : > { %s6819_s25 = smov (!%p269_p3, %s4228_s25), 1  ;;  %4697 = vmatpush3.bf16.msra.mxu0 %v5091_v0  ;;  %5071 = vmatpush3.bf16.msra.mxu1 %v5091_v0  ;;  %282 = vst.msk [vmem:[#allocation2 + $0x8] sm:$0xff] %vm280_vm2, %v5148_v19  ;;  %283 = vst.msk [vmem:[#allocation2 + $0x10] sm:$0xff] %vm280_vm2, %v5148_v19  ;;  %v1377_v21 = vsel %vm1208_vm0, %v4271_v20, 0  ;;  %v5262_v25 = vld [vmem:[%s6653_s3 + $0xe] sm:$0x3] }
   0xe   : > { %s4475_s30 = sshll.u32 %s6819_s25, 7  ;;  %5072 = vmatprep.subr.msk.bf16.mxu1 %vm1208_vm0, %v4272_v1  ;;  %281 = vst.msk [vmem:[#allocation2] sm:$0xff] %vm280_vm2, %v5148_v19  ;;  %284 = vst.msk [vmem:[#allocation2 + $0x118] sm:$0xff] %vm280_vm2, %v5148_v19  ;;  %5073 = vmatprep.subr.msk.bf16.mxu0 %vm1208_vm0, %v4271_v20  ;;  %v5269_v26 = vld [vmem:[%s6653_s3 + $0x6] sm:$0x3] }
   0xf   : > { %s5212_s10 = scalar_lea.vmem %s6650_s0, %s4475_s30  ;;  %285 = vst.msk [vmem:[#allocation2 + $0x120] sm:$0xff] %vm280_vm2, %v5148_v19  ;;  %286 = vst.msk [vmem:[#allocation2 + $0x128] sm:$0xff] %vm280_vm2, %v5148_v19  ;;  %v5276_v27 = vld [vmem:[%s6652_s2] ss:$0 sm:$0xff]  ;;  %s6538_s18 = scalar_lea.vmem %s6657_s7, %s4475_s30 }
  0x10   : > { %v287_v2 = vld [vmem:[%s5212_s10] sm:$0xff]   ;;  %v289_v3 = vld [vmem:[%s5212_s10 + $0x8] sm:$0xff]   ;;  %v291_v4 = vld [vmem:[%s5212_s10 + $0x10] sm:$0xff]  }
  0x11   : > { %v303_v5 = vld [vmem:[%s5212_s10 + $0x40] sm:$0xff]   ;;  %v305_v6 = vld [vmem:[%s5212_s10 + $0x48] sm:$0xff]   ;;  %4698 = vmatprep.mubr.msk.bf16.mxu0 %vm414_vm1, %v287_v2  ;;  %v307_v7 = vld [vmem:[%s5212_s10 + $0x50] sm:$0xff]  }
  0x12   : > { %4699 = vmatmul.mubr.msk.bf16.vlgmr.msra.gmra.mxu0 %vm414_vm1, %v289_v3  ;;  %v293_v9 = vld [vmem:[%s5212_s10 + $0x18] sm:$0xff]   ;;  %4714 = vmatprep.mubr.msk.bf16.mxu1 %vm414_vm1, %v303_v5  ;;  %v295_v10 = vld [vmem:[%s5212_s10 + $0x20] sm:$0xff]   ;;  %v297_v13 = vld [vmem:[%s5212_s10 + $0x28] sm:$0xff]  }
  0x13   : > { %4702 = vmatprep.mubr.msk.bf16.mxu0 %vm414_vm1, %v291_v4  ;;  %4715 = vmatmul.mubr.msk.bf16.vlgmr.msra.gmra.mxu1 %vm414_vm1, %v305_v6  ;;  %v309_v11 = vld [vmem:[%s5212_s10 + $0x58] sm:$0xff]   ;;  %v311_v12 = vld [vmem:[%s5212_s10 + $0x60] sm:$0xff]   ;;  %v299_v14 = vld [vmem:[%s5212_s10 + $0x30] sm:$0xff]  }
  0x14   : > { %4718 = vmatprep.mubr.msk.bf16.mxu1 %vm414_vm1, %v307_v7  ;;  %4731 = vmatpush3.bf16.msra.mxu1 %v1210_v8  ;;  %v313_v15 = vld [vmem:[%s5212_s10 + $0x68] sm:$0xff]   ;;  %v315_v16 = vld [vmem:[%s5212_s10 + $0x70] sm:$0xff]   ;;  %v301_v17 = vld [vmem:[%s5212_s10 + $0x38] sm:$0xff]  }
  0x15   : > { %v317_v18 = vld [vmem:[%s5212_s10 + $0x78] sm:$0xff]   ;;  %v1105_v22 = vld [vmem:[#allocation2 + $0x8] sm:$0xff]  ;;  %v1106_v23 = vld [vmem:[#allocation2 + $0x10] sm:$0xff]  ;;  %4765 = vmatpush3.bf16.msra.mxu0 %v1377_v21  ;;  %5074 = vmatprep.subr.msk.bf16.mxu1 %vm1208_vm0, %v5262_v25 }
  0x16   : > { %v1137_v24 = vpack.c.bf16 %v1106_v23, %v1105_v22  ;;  %5075 = vmatprep.subr.msk.bf16.mxu0 %vm1208_vm0, %v5269_v26 }
  0x1a   : > { %4703 = vmatmul.mubr.msk.bf16.gmra.mxu0 %vm414_vm1, %v293_v9 }
  0x1b   : > { %4706 = vmatprep.mubr.msk.bf16.mxu0 %vm414_vm1, %v295_v10  ;;  %4719 = vmatmul.mubr.msk.bf16.gmra.mxu1 %vm414_vm1, %v309_v11 }
  0x1c   : > { %4722 = vmatprep.mubr.msk.bf16.mxu1 %vm414_vm1, %v311_v12 }
  0x22   : > { %4707 = vmatmul.mubr.msk.bf16.gmra.mxu0 %vm414_vm1, %v297_v13 }
  0x23   : > { %4710 = vmatprep.mubr.msk.bf16.mxu0 %vm414_vm1, %v299_v14  ;;  %4723 = vmatmul.mubr.msk.bf16.gmra.mxu1 %vm414_vm1, %v313_v15 }
  0x24   : > { %4726 = vmatprep.mubr.msk.bf16.mxu1 %vm414_vm1, %v315_v16 }
  0x2a   : > { %4711 = vmatmul.mubr.msk.bf16.gmra.mxu0 %vm414_vm1, %v301_v17 }
  0x2b   : > { %4727 = vmatmul.mubr.msk.bf16.gmra.mxu1 %vm414_vm1, %v317_v18  ;;  %4766 = vmatprep.mubr.msk.bf16.mxu0 %vm280_vm2, %v1137_v24 }
  0xd2   : > { %v4700_v28 = vpop.f32.mrf.mxu0 }
  0xd3   : > { %v506_v29 = vadd.f32 %v4700_v28, %v5276_v27  ;;  %v4716_v31 = vpop.f32.mrf.mxu1  ;;  %v1639_v28 = vsel %vm1208_vm0, %v5262_v25, 0  ;;  %v5326_v25 = vld [vmem:[%s6653_s3] sm:$0x3] }
  0xd4   : > { %v497_v30 = vpop.f32.mrf.mxu0  ;;  %v570_v34 = vadd.f32 %v4716_v31, %v5276_v27  ;;  %v1969_v31 = vsel %vm1208_vm0, %v5269_v26, 0  ;;  %v5331_v26 = vld [vmem:[%s6653_s3 + $0xc] sm:$0x3] }
  0xd5   : > { %v626_v32 = vmax.f32 %v506_v29, 0.0  ;;  %v498_v33 = vadd.f32 %v5276_v27, %v497_v30  ;;  %v561_v36 = vpop.f32.mrf.mxu1 }
  0xd6   : > { %v4701_v35 = vpop.f32.mrf.mxu0  ;;  %v642_v39 = vmax.f32 %v570_v34, 0.0  ;;  %v562_v40 = vadd.f32 %v5276_v27, %v561_v36 }
  0xd7   : > { %658 = vst.msk [vmem:[#allocation2 + $0x28] sm:$0xff] %vm280_vm2, %v626_v32  ;;  %v624_v37 = vmax.f32 %v498_v33, 0.0  ;;  %v509_v38 = vadd.f32 %v4701_v35, %v5276_v27  ;;  %v4717_v42 = vpop.f32.mrf.mxu1 }
  0xd8   : > { %v500_v41 = vpop.f32.mrf.mxu0  ;;  %674 = vst.msk [vmem:[#allocation2 + $0xa8] sm:$0xff] %vm280_vm2, %v642_v39  ;;  %v640_v45 = vmax.f32 %v562_v40, 0.0  ;;  %v573_v46 = vadd.f32 %v4717_v42, %v5276_v27 }
  0xd9   : > { %656 = vst.msk [vmem:[#allocation2 + $0x18] sm:$0xff] %vm280_vm2, %v624_v37  ;;  %v627_v43 = vmax.f32 %v509_v38, 0.0  ;;  %v501_v44 = vadd.f32 %v5276_v27, %v500_v41  ;;  %v564_v48 = vpop.f32.mrf.mxu1 }
  0xda   : > { %v4704_v47 = vpop.f32.mrf.mxu0  ;;  %672 = vst.msk [vmem:[#allocation2 + $0x98] sm:$0xff] %vm280_vm2, %v640_v45  ;;  %v643_v51 = vmax.f32 %v573_v46, 0.0  ;;  %v565_v52 = vadd.f32 %v5276_v27, %v564_v48 }
  0xdb   : > { %659 = vst.msk [vmem:[#allocation2 + $0x30] sm:$0xff] %vm280_vm2, %v627_v43  ;;  %v625_v49 = vmax.f32 %v501_v44, 0.0  ;;  %v522_v50 = vadd.f32 %v4704_v47, %v5276_v27  ;;  %v4720_v54 = vpop.f32.mrf.mxu1 }
  0xdc   : > { %v513_v53 = vpop.f32.mrf.mxu0  ;;  %675 = vst.msk [vmem:[#allocation2 + $0xb0] sm:$0xff] %vm280_vm2, %v643_v51  ;;  %v641_v57 = vmax.f32 %v565_v52, 0.0  ;;  %v586_v58 = vadd.f32 %v4720_v54, %v5276_v27 }
  0xdd   : > { %657 = vst.msk [vmem:[#allocation2 + $0x20] sm:$0xff] %vm280_vm2, %v625_v49  ;;  %v630_v55 = vmax.f32 %v522_v50, 0.0  ;;  %v514_v56 = vadd.f32 %v5276_v27, %v513_v53  ;;  %v577_v60 = vpop.f32.mrf.mxu1 }
  0xde   : > { %v4705_v59 = vpop.f32.mrf.mxu0  ;;  %673 = vst.msk [vmem:[#allocation2 + $0xa0] sm:$0xff] %vm280_vm2, %v641_v57  ;;  %v646_v63 = vmax.f32 %v586_v58, 0.0  ;;  %v578_v0 = vadd.f32 %v5276_v27, %v577_v60  ;;  %v1109_v21 = vld [vmem:[#allocation2 + $0x28] sm:$0xff] }
  0xdf   : > { %662 = vst.msk [vmem:[#allocation2 + $0x48] sm:$0xff] %vm280_vm2, %v630_v55  ;;  %v628_v61 = vmax.f32 %v514_v56, 0.0  ;;  %v525_v62 = vadd.f32 %v4705_v59, %v5276_v27  ;;  %v4721_v2 = vpop.f32.mrf.mxu1 }
  0xe0   : > { %v516_v1 = vpop.f32.mrf.mxu0  ;;  %678 = vst.msk [vmem:[#allocation2 + $0xc8] sm:$0xff] %vm280_vm2, %v646_v63  ;;  %v644_v5 = vmax.f32 %v578_v0, 0.0  ;;  %v589_v6 = vadd.f32 %v4721_v2, %v5276_v27  ;;  %v1107_v14 = vld [vmem:[#allocation2 + $0x18] sm:$0xff] }
  0xe1   : > { %660 = vst.msk [vmem:[#allocation2 + $0x38] sm:$0xff] %vm280_vm2, %v628_v61  ;;  %v631_v3 = vmax.f32 %v525_v62, 0.0  ;;  %v517_v4 = vadd.f32 %v5276_v27, %v516_v1  ;;  %v580_v8 = vpop.f32.mrf.mxu1 }
  0xe2   : > { %v4708_v7 = vpop.f32.mrf.mxu0  ;;  %v1110_v11 = vld [vmem:[#allocation2 + $0x30] sm:$0xff]  ;;  %676 = vst.msk [vmem:[#allocation2 + $0xb8] sm:$0xff] %vm280_vm2, %v644_v5  ;;  %v647_v12 = vmax.f32 %v589_v6, 0.0  ;;  %v581_v16 = vadd.f32 %v5276_v27, %v580_v8 }
  0xe3   : > { %663 = vst.msk [vmem:[#allocation2 + $0x50] sm:$0xff] %vm280_vm2, %v631_v3  ;;  %v629_v9 = vmax.f32 %v517_v4, 0.0  ;;  %v538_v10 = vadd.f32 %v4708_v7, %v5276_v27  ;;  %v4724_v17 = vpop.f32.mrf.mxu1  ;;  %v5312_v24 = vpack.c.bf16 %v1110_v11, %v1109_v21 }
  0xe4   : > { %v529_v13 = vpop.f32.mrf.mxu0  ;;  %v1108_v15 = vld [vmem:[#allocation2 + $0x20] sm:$0xff]  ;;  %679 = vst.msk [vmem:[#allocation2 + $0xd0] sm:$0xff] %vm280_vm2, %v647_v12  ;;  %v602_v22 = vadd.f32 %v4724_v17, %v5276_v27  ;;  %v645_v29 = vmax.f32 %v581_v16, 0.0 }
  0xe5   : > { %661 = vst.msk [vmem:[#allocation2 + $0x40] sm:$0xff] %vm280_vm2, %v629_v9  ;;  %v634_v18 = vmax.f32 %v538_v10, 0.0  ;;  %v530_v19 = vadd.f32 %v5276_v27, %v529_v13  ;;  %v1138_v20 = vpack.c.bf16 %v1108_v15, %v1107_v14  ;;  %v593_v30 = vpop.f32.mrf.mxu1 }
  0xe6   : > { %v4709_v23 = vpop.f32.mrf.mxu0  ;;  %v650_v34 = vmax.f32 %v602_v22, 0.0  ;;  %v594_v35 = vadd.f32 %v5276_v27, %v593_v30  ;;  %677 = vst.msk [vmem:[#allocation2 + $0xc0] sm:$0xff] %vm280_vm2, %v645_v29  ;;  %v1113_v56 = vld [vmem:[#allocation2 + $0x48] sm:$0xff] }
  0xe7   : > { %666 = vst.msk [vmem:[#allocation2 + $0x68] sm:$0xff] %vm280_vm2, %v634_v18  ;;  %v632_v32 = vmax.f32 %v530_v19, 0.0  ;;  %v541_v33 = vadd.f32 %v4709_v23, %v5276_v27  ;;  %4732 = vmatprep.mubr.msk.bf16.mxu1 %vm280_vm2, %v1138_v20  ;;  %4767 = vmatmul.mubr.msk.bf16.vlgmr.msra.gmra.mxu0 %vm280_vm2, %v1138_v20  ;;  %v4725_v37 = vpop.f32.mrf.mxu1  ;;  %v1124_v19 = vld [vmem:[#allocation2 + $0xa0] sm:$0xff] }
  0xe8   : > { %v532_v36 = vpop.f32.mrf.mxu0  ;;  %4733 = vmatmul.mubr.msk.bf16.vlgmr.msra.gmra.mxu1 %vm280_vm2, %v5312_v24  ;;  %4770 = vmatprep.mubr.msk.bf16.mxu0 %vm280_vm2, %v5312_v24  ;;  %682 = vst.msk [vmem:[#allocation2 + $0xe8] sm:$0xff] %vm280_vm2, %v650_v34  ;;  %v648_v40 = vmax.f32 %v594_v35, 0.0  ;;  %v605_v41 = vadd.f32 %v4725_v37, %v5276_v27  ;;  %v1111_v49 = vld [vmem:[#allocation2 + $0x38] sm:$0xff]  ;;  %v1126_v34 = vld [vmem:[#allocation2 + $0xb0] sm:$0xff] }
  0xe9   : > { %664 = vst.msk [vmem:[#allocation2 + $0x58] sm:$0xff] %vm280_vm2, %v632_v32  ;;  %v635_v38 = vmax.f32 %v541_v33, 0.0  ;;  %v533_v39 = vadd.f32 %v5276_v27, %v532_v36  ;;  %4799 = vmatpush3.bf16.msra.mxu1 %v1639_v28  ;;  %4833 = vmatpush3.bf16.msra.mxu0 %v1969_v31  ;;  %v596_v43 = vpop.f32.mrf.mxu1  ;;  %v1127_v31 = vld [vmem:[#allocation2 + $0xb8] sm:$0xff]  ;;  %v1125_v33 = vld [vmem:[#allocation2 + $0xa8] sm:$0xff] }
  0xea   : > { %v4712_v42 = vpop.f32.mrf.mxu0  ;;  %5076 = vmatprep.subr.msk.bf16.mxu1 %vm1208_vm0, %v5326_v25  ;;  %5077 = vmatprep.subr.msk.bf16.mxu0 %vm1208_vm0, %v5331_v26  ;;  %v1114_v46 = vld [vmem:[#allocation2 + $0x50] sm:$0xff]  ;;  %680 = vst.msk [vmem:[#allocation2 + $0xd8] sm:$0xff] %vm280_vm2, %v648_v40  ;;  %v651_v47 = vmax.f32 %v605_v41, 0.0  ;;  %v597_v51 = vadd.f32 %v5276_v27, %v596_v43  ;;  %v5410_v36 = vpack.c.bf16 %v1126_v34, %v1125_v33 }
  0xeb   : > { %667 = vst.msk [vmem:[#allocation2 + $0x70] sm:$0xff] %vm280_vm2, %v635_v38  ;;  %v633_v44 = vmax.f32 %v533_v39, 0.0  ;;  %v554_v45 = vadd.f32 %v4712_v42, %v5276_v27  ;;  %v4728_v52 = vpop.f32.mrf.mxu1  ;;  %v5356_v59 = vpack.c.bf16 %v1114_v46, %v1113_v56  ;;  %v1129_v39 = vld [vmem:[#allocation2 + $0xc8] sm:$0xff]  ;;  %v1130_v40 = vld [vmem:[#allocation2 + $0xd0] sm:$0xff] }
  0xec   : > { %v545_v48 = vpop.f32.mrf.mxu0  ;;  %v1112_v50 = vld [vmem:[#allocation2 + $0x40] sm:$0xff]  ;;  %683 = vst.msk [vmem:[#allocation2 + $0xf0] sm:$0xff] %vm280_vm2, %v651_v47  ;;  %v618_v57 = vadd.f32 %v4728_v52, %v5276_v27  ;;  %v649_v60 = vmax.f32 %v597_v51, 0.0  ;;  %v5422_v42 = vpack.c.bf16 %v1130_v40, %v1129_v39  ;;  %v1868_v52 = vld [vmem:[#allocation2 + $0x17] sm:$0xff] }
  0xed   : > { %665 = vst.msk [vmem:[#allocation2 + $0x60] sm:$0xff] %vm280_vm2, %v633_v44  ;;  %v638_v53 = vmax.f32 %v554_v45, 0.0  ;;  %v546_v54 = vadd.f32 %v5276_v27, %v545_v48  ;;  %v5352_v55 = vpack.c.bf16 %v1112_v50, %v1111_v49  ;;  %v609_v61 = vpop.f32.mrf.mxu1  ;;  %v1128_v32 = vld [vmem:[#allocation2 + $0xc0] sm:$0xff] }
  0xee   : > { %v4713_v58 = vpop.f32.mrf.mxu0  ;;  %v654_v0 = vmax.f32 %v618_v57, 0.0  ;;  %v610_v1 = vadd.f32 %v5276_v27, %v609_v61  ;;  %681 = vst.msk [vmem:[#allocation2 + $0xe0] sm:$0xff] %vm280_vm2, %v649_v60  ;;  %v1117_v16 = vld [vmem:[#allocation2 + $0x68] sm:$0xff]  ;;  %v5408_v35 = vpack.c.bf16 %v1128_v32, %v1127_v31  ;;  %v1869_v51 = vld [vmem:[#allocation2 + $0x1f] sm:$0xff]  ;;  %v1872_v61 = vld [vmem:[#allocation2 + $0x37] sm:$0xff] }
  0xef   : > { %670 = vst.msk [vmem:[#allocation2 + $0x88] sm:$0xff] %vm280_vm2, %v638_v53  ;;  %v636_v62 = vmax.f32 %v546_v54, 0.0  ;;  %v557_v63 = vadd.f32 %v4713_v58, %v5276_v27  ;;  %4736 = vmatprep.mubr.msk.bf16.mxu1 %vm280_vm2, %v5352_v55  ;;  %4771 = vmatmul.mubr.msk.bf16.gmra.mxu0 %vm280_vm2, %v5352_v55  ;;  %v4729_v3 = vpop.f32.mrf.mxu1  ;;  %v1133_v45 = vld [vmem:[#allocation2 + $0xe8] sm:$0xff]  ;;  %v5446_v54 = vpack.c.bf16 %v1869_v51, %v1868_v52  ;;  %v1873_v57 = vld [vmem:[#allocation2 + $0x3f] sm:$0xff]  ;;  %v2754_v52 = vld [vmem:[#allocation2 + $0x11] sm:$0xff] }
  0xf0   : > { %v548_v2 = vpop.f32.mrf.mxu0  ;;  %4737 = vmatmul.mubr.msk.bf16.gmra.mxu1 %vm280_vm2, %v5356_v59  ;;  %4774 = vmatprep.mubr.msk.bf16.mxu0 %vm280_vm2, %v5356_v59  ;;  %686 = vst.msk [vmem:[#allocation2 + $0x108] sm:$0xff] %vm280_vm2, %v654_v0  ;;  %v652_v6 = vmax.f32 %v610_v1, 0.0  ;;  %v621_v7 = vadd.f32 %v4729_v3, %v5276_v27  ;;  %v1115_v13 = vld [vmem:[#allocation2 + $0x58] sm:$0xff]  ;;  %v1870_v56 = vld [vmem:[#allocation2 + $0x27] sm:$0xff]  ;;  %v1871_v58 = vld [vmem:[#allocation2 + $0x2f] sm:$0xff]  ;;  %v2398_v0 = vsel %vm1208_vm0, %v5331_v26, 0 }
  0xf1   : > { %668 = vst.msk [vmem:[#allocation2 + $0x78] sm:$0xff] %vm280_vm2, %v636_v62  ;;  %v639_v4 = vmax.f32 %v557_v63, 0.0  ;;  %v549_v5 = vadd.f32 %v5276_v27, %v548_v2  ;;  %v612_v8 = vpop.f32.mrf.mxu1  ;;  %v1131_v37 = vld [vmem:[#allocation2 + $0xd8] sm:$0xff]  ;;  %v5456_v60 = vpack.c.bf16 %v1871_v58, %v1870_v56  ;;  %v5458_v62 = vpack.c.bf16 %v1873_v57, %v1872_v61  ;;  %v1874_v26 = vld [vmem:[#allocation2 + $0x47] sm:$0xff] }
  0xf2   : > { %v1118_v10 = vld [vmem:[#allocation2 + $0x70] sm:$0xff]  ;;  %684 = vst.msk [vmem:[#allocation2 + $0xf8] sm:$0xff] %vm280_vm2, %v652_v6  ;;  %v655_v11 = vmax.f32 %v621_v7, 0.0  ;;  %v613_v12 = vadd.f32 %v5276_v27, %v612_v8  ;;  %v1123_v27 = vld [vmem:[#allocation2 + $0x98] sm:$0xff]  ;;  %v2136_v63 = vsel %vm1208_vm0, %v5326_v25, 0  ;;  %v1866_v39 = vld [vmem:[#allocation2 + $0x7] sm:$0xff] }
  0xf3   : > { %671 = vst.msk [vmem:[#allocation2 + $0x90] sm:$0xff] %vm280_vm2, %v639_v4  ;;  %v637_v9 = vmax.f32 %v549_v5, 0.0  ;;  %v5381_v18 = vpack.c.bf16 %v1118_v10, %v1117_v16  ;;  %v5394_v29 = vpack.c.bf16 %v1124_v19, %v1123_v27  ;;  %v1134_v46 = vld [vmem:[#allocation2 + $0xf0] sm:$0xff]  ;;  %v5478_v25 = vld [vmem:[%s6653_s3 + $0x4] sm:$0x3]  ;;  %v1886_v16 = vld [vmem:[#allocation2 + $0xa7] sm:$0xff] }
  0xf4   : > { %v1116_v14 = vld [vmem:[#allocation2 + $0x60] sm:$0xff]  ;;  %687 = vst.msk [vmem:[#allocation2 + $0x110] sm:$0xff] %vm280_vm2, %v655_v11  ;;  %v653_v17 = vmax.f32 %v613_v12, 0.0  ;;  %v5434_v48 = vpack.c.bf16 %v1134_v46, %v1133_v45  ;;  %v1876_v3 = vld [vmem:[#allocation2 + $0x57] sm:$0xff]  ;;  %v1879_v6 = vld [vmem:[#allocation2 + $0x6f] sm:$0xff] }
  0xf5   : > { %669 = vst.msk [vmem:[#allocation2 + $0x80] sm:$0xff] %vm280_vm2, %v637_v9  ;;  %v5378_v15 = vpack.c.bf16 %v1116_v14, %v1115_v13  ;;  %v1132_v38 = vld [vmem:[#allocation2 + $0xe0] sm:$0xff]  ;;  %v1895_v32 = vld [vmem:[#allocation2 + $0xef] sm:$0xff] }
  0xf6   : > { %685 = vst.msk [vmem:[#allocation2 + $0x100] sm:$0xff] %vm280_vm2, %v653_v17  ;;  %v1121_v28 = vld [vmem:[#allocation2 + $0x88] sm:$0xff]  ;;  %v5420_v41 = vpack.c.bf16 %v1132_v38, %v1131_v37  ;;  %v1877_v1 = vld [vmem:[#allocation2 + $0x5f] sm:$0xff] }
  0xf7   : > { %4740 = vmatprep.mubr.msk.bf16.mxu1 %vm280_vm2, %v5378_v15  ;;  %4775 = vmatmul.mubr.msk.bf16.gmra.mxu0 %vm280_vm2, %v5378_v15  ;;  %v1155_v49 = vld [vmem:[#allocation2 + $0x108] sm:$0xff]  ;;  %v5488_v4 = vpack.c.bf16 %v1877_v1, %v1876_v3  ;;  %v1885_v12 = vld [vmem:[#allocation2 + $0x9f] sm:$0xff] }
  0xf8   : > { %4741 = vmatmul.mubr.msk.bf16.gmra.mxu1 %vm280_vm2, %v5381_v18  ;;  %4778 = vmatprep.mubr.msk.bf16.mxu0 %vm280_vm2, %v5381_v18  ;;  %v1119_v21 = vld [vmem:[#allocation2 + $0x78] sm:$0xff]  ;;  %v1887_v17 = vld [vmem:[#allocation2 + $0xaf] sm:$0xff]  ;;  %v1894_v31 = vld [vmem:[#allocation2 + $0xe7] sm:$0xff] }
  0xf9   : > { %v1135_v43 = vld [vmem:[#allocation2 + $0xf8] sm:$0xff]  ;;  %v5522_v19 = vpack.c.bf16 %v1887_v17, %v1886_v16  ;;  %v1571_v38 = vld [vmem:[#allocation2 + $0x120] sm:$0xff]  ;;  %v2753_v51 = vld [vmem:[#allocation2 + $0x9] sm:$0xff] }
  0xfa   : > { %v1122_v20 = vld [vmem:[#allocation2 + $0x90] sm:$0xff]  ;;  %v1889_v27 = vld [vmem:[#allocation2 + $0xbf] sm:$0xff]  ;;  %v2785_v57 = vpack.c.bf16 %v2754_v52, %v2753_v51 }
  0xfb   : > { %v5396_v30 = vpack.c.bf16 %v1122_v20, %v1121_v28  ;;  %v1156_v50 = vld [vmem:[#allocation2 + $0x110] sm:$0xff]  ;;  %v1893_v28 = vld [vmem:[#allocation2 + $0xdf] sm:$0xff] }
  0xfc   : > { %v1120_v22 = vld [vmem:[#allocation2 + $0x80] sm:$0xff]  ;;  %v5444_v53 = vpack.c.bf16 %v1156_v50, %v1155_v49  ;;  %v1880_v8 = vld [vmem:[#allocation2 + $0x77] sm:$0xff]  ;;  %v1883_v13 = vld [vmem:[#allocation2 + $0x8f] sm:$0xff] }
  0xfd   : > { %v5392_v23 = vpack.c.bf16 %v1120_v22, %v1119_v21  ;;  %v1136_v44 = vld [vmem:[#allocation2 + $0x100] sm:$0xff]  ;;  %v1884_v11 = vld [vmem:[#allocation2 + $0x97] sm:$0xff]  ;;  %v1891_v22 = vld [vmem:[#allocation2 + $0xcf] sm:$0xff] }
  0xfe   : > { %v5432_v47 = vpack.c.bf16 %v1136_v44, %v1135_v43  ;;  %v1881_v5 = vld [vmem:[#allocation2 + $0x7f] sm:$0xff]  ;;  %v1882_v10 = vld [vmem:[#allocation2 + $0x87] sm:$0xff]  ;;  %v1896_v33 = vld [vmem:[#allocation2 + $0xf7] sm:$0xff] }
  0xff   : > { %4744 = vmatprep.mubr.msk.bf16.mxu1 %vm280_vm2, %v5392_v23  ;;  %4779 = vmatmul.mubr.msk.bf16.gmra.mxu0 %vm280_vm2, %v5392_v23  ;;  %v5500_v9 = vpack.c.bf16 %v1881_v5, %v1880_v8  ;;  %v5510_v14 = vpack.c.bf16 %v1883_v13, %v1882_v10  ;;  %v1890_v21 = vld [vmem:[#allocation2 + $0xc7] sm:$0xff]  ;;  %v1897_v34 = vld [vmem:[#allocation2 + $0xff] sm:$0xff]  ;;  %v2329_v49 = vld [vmem:[#allocation2 + $0x117] sm:$0xff] }
 0x100   : > { %4745 = vmatmul.mubr.msk.bf16.gmra.mxu1 %vm280_vm2, %v5396_v30  ;;  %4782 = vmatprep.mubr.msk.bf16.mxu0 %vm280_vm2, %v5396_v30  ;;  %v1570_v37 = vld [vmem:[#allocation2 + $0x118] sm:$0xff]  ;;  %v1915_v40 = vld [vmem:[#allocation2 + $0x107] sm:$0xff] }
 0x101   : > { %4748 = vmatprep.mubr.msk.bf16.mxu1 %vm280_vm2, %v5394_v29  ;;  %v1587_v43 = vpack.c.bf16 %v1571_v38, %v1570_v37  ;;  %v2330_v50 = vld [vmem:[#allocation2 + $0x11f] sm:$0xff]  ;;  %v2762_v5 = vld [vmem:[#allocation2 + $0x51] sm:$0xff] }
 0x102   : > { %v2346_v56 = vpack.c.bf16 %v2330_v50, %v2329_v49  ;;  %v2759_v61 = vld [vmem:[#allocation2 + $0x39] sm:$0xff]  ;;  %v2764_v8 = vld [vmem:[#allocation2 + $0x61] sm:$0xff] }
 0x107   : > { %4783 = vmatmul.mubr.msk.bf16.gmra.mxu0 %vm280_vm2, %v5394_v29 }
 0x108   : > { %4749 = vmatmul.mubr.msk.bf16.gmra.mxu1 %vm280_vm2, %v5410_v36  ;;  %4786 = vmatprep.mubr.msk.bf16.mxu0 %vm280_vm2, %v5410_v36 }
 0x109   : > { %4752 = vmatprep.mubr.msk.bf16.mxu1 %vm280_vm2, %v5408_v35 }
 0x10f   : > { %4787 = vmatmul.mubr.msk.bf16.gmra.mxu0 %vm280_vm2, %v5408_v35 }
 0x110   : > { %4753 = vmatmul.mubr.msk.bf16.gmra.mxu1 %vm280_vm2, %v5422_v42  ;;  %4790 = vmatprep.mubr.msk.bf16.mxu0 %vm280_vm2, %v5422_v42 }
 0x111   : > { %4756 = vmatprep.mubr.msk.bf16.mxu1 %vm280_vm2, %v5420_v41 }
 0x117   : > { %4791 = vmatmul.mubr.msk.bf16.gmra.mxu0 %vm280_vm2, %v5420_v41 }
 0x118   : > { %4757 = vmatmul.mubr.msk.bf16.gmra.mxu1 %vm280_vm2, %v5434_v48  ;;  %4794 = vmatprep.mubr.msk.bf16.mxu0 %vm280_vm2, %v5434_v48 }
 0x119   : > { %4760 = vmatprep.mubr.msk.bf16.mxu1 %vm280_vm2, %v5432_v47 }
 0x11f   : > { %4795 = vmatmul.mubr.msk.bf16.gmra.mxu0 %vm280_vm2, %v5432_v47 }
 0x120   : > { %4761 = vmatmul.mubr.msk.bf16.gmra.mxu1 %vm280_vm2, %v5444_v53  ;;  %4834 = vmatprep.mubr.msk.bf16.mxu0 %vm280_vm2, %v5446_v54 }
 0x121   : > { %4800 = vmatprep.mubr.msk.bf16.mxu1 %vm280_vm2, %v5312_v24  ;;  %v5469_v24 = vld [vmem:[%s6653_s3 + $0xa] sm:$0x3] }
 0x122   : > { %v2857_v46 = vsel %vm1208_vm0, %v5469_v24, 0 }
 0x127   : > { %4835 = vmatmul.mubr.msk.bf16.vlgmr.msra.gmra.mxu0 %vm280_vm2, %v5456_v60 }
 0x128   : > { %4801 = vmatmul.mubr.msk.bf16.vlgmr.msra.gmra.mxu1 %vm280_vm2, %v5352_v55  ;;  %4838 = vmatprep.mubr.msk.bf16.mxu0 %vm280_vm2, %v5458_v62  ;;  %v1875_v55 = vld [vmem:[#allocation2 + $0x4f] sm:$0xff] }
 0x129   : > { %4867 = vmatpush3.bf16.msra.mxu1 %v2136_v63  ;;  %4804 = vmatprep.mubr.msk.bf16.mxu1 %vm280_vm2, %v5356_v59  ;;  %v5486_v2 = vpack.c.bf16 %v1875_v55, %v1874_v26  ;;  %v1878_v59 = vld [vmem:[#allocation2 + $0x67] sm:$0xff] }
 0x12a   : > { %4901 = vmatpush3.bf16.msra.mxu0 %v2398_v0  ;;  %5078 = vmatprep.subr.msk.bf16.mxu1 %vm1208_vm0, %v5469_v24  ;;  %v5498_v7 = vpack.c.bf16 %v1879_v6, %v1878_v59  ;;  %v2757_v63 = vld [vmem:[#allocation2 + $0x29] sm:$0xff] }
 0x12b   : > { %5079 = vmatprep.subr.msk.bf16.mxu0 %vm1208_vm0, %v5478_v25 }
 0x12f   : > { %4839 = vmatmul.mubr.msk.bf16.gmra.mxu0 %vm280_vm2, %v5486_v2 }
 0x130   : > { %4805 = vmatmul.mubr.msk.bf16.gmra.mxu1 %vm280_vm2, %v5378_v15  ;;  %4842 = vmatprep.mubr.msk.bf16.mxu0 %vm280_vm2, %v5488_v4  ;;  %v5512_v15 = vpack.c.bf16 %v1885_v12, %v1884_v11  ;;  %v2761_v11 = vld [vmem:[#allocation2 + $0x49] sm:$0xff] }
 0x131   : > { %4808 = vmatprep.mubr.msk.bf16.mxu1 %vm280_vm2, %v5381_v18  ;;  %v1888_v18 = vld [vmem:[#allocation2 + $0xb7] sm:$0xff]  ;;  %v5629_v13 = vpack.c.bf16 %v2762_v5, %v2761_v11 }
 0x132   : > { %v5524_v20 = vpack.c.bf16 %v1889_v27, %v1888_v18 }
 0x137   : > { %4843 = vmatmul.mubr.msk.bf16.gmra.mxu0 %vm280_vm2, %v5498_v7 }
 0x138   : > { %4809 = vmatmul.mubr.msk.bf16.gmra.mxu1 %vm280_vm2, %v5392_v23  ;;  %4846 = vmatprep.mubr.msk.bf16.mxu0 %vm280_vm2, %v5500_v9  ;;  %v1892_v23 = vld [vmem:[#allocation2 + $0xd7] sm:$0xff] }
 0x139   : > { %4812 = vmatprep.mubr.msk.bf16.mxu1 %vm280_vm2, %v5396_v30  ;;  %v1911_v30 = vpack.c.bf16 %v1893_v28, %v1892_v23  ;;  %v2767_v28 = vld [vmem:[#allocation2 + $0x79] sm:$0xff] }
 0x13f   : > { %4847 = vmatmul.mubr.msk.bf16.gmra.mxu0 %vm280_vm2, %v5510_v14 }
 0x140   : > { %4813 = vmatmul.mubr.msk.bf16.gmra.mxu1 %vm280_vm2, %v5394_v29  ;;  %4850 = vmatprep.mubr.msk.bf16.mxu0 %vm280_vm2, %v5512_v15  ;;  %v1910_v29 = vpack.c.bf16 %v1891_v22, %v1890_v21  ;;  %v2766_v22 = vld [vmem:[#allocation2 + $0x71] sm:$0xff] }
 0x141   : > { %4816 = vmatprep.mubr.msk.bf16.mxu1 %vm280_vm2, %v5410_v36  ;;  %v1913_v36 = vpack.c.bf16 %v1897_v34, %v1896_v33 }
 0x147   : > { %4851 = vmatmul.mubr.msk.bf16.gmra.mxu0 %vm280_vm2, %v5522_v19 }
 0x148   : > { %4817 = vmatmul.mubr.msk.bf16.gmra.mxu1 %vm280_vm2, %v5408_v35  ;;  %4854 = vmatprep.mubr.msk.bf16.mxu0 %vm280_vm2, %v5524_v20  ;;  %v1912_v35 = vpack.c.bf16 %v1895_v32, %v1894_v31  ;;  %v2765_v32 = vld [vmem:[#allocation2 + $0x69] sm:$0xff] }
 0x149   : > { %4820 = vmatprep.mubr.msk.bf16.mxu1 %vm280_vm2, %v5422_v42  ;;  %v1867_v42 = vld [vmem:[#allocation2 + $0xf] sm:$0xff]  ;;  %v5649_v34 = vpack.c.bf16 %v2766_v22, %v2765_v32 }
 0x14a   : > { %v1898_v45 = vpack.c.bf16 %v1867_v42, %v1866_v39  ;;  %v2777_v22 = vld [vmem:[#allocation2 + $0xc9] sm:$0xff] }
 0x14f   : > { %4855 = vmatmul.mubr.msk.bf16.gmra.mxu0 %vm280_vm2, %v1910_v29 }
 0x150   : > { %4821 = vmatmul.mubr.msk.bf16.gmra.mxu1 %vm280_vm2, %v5420_v41  ;;  %4858 = vmatprep.mubr.msk.bf16.mxu0 %vm280_vm2, %v1911_v30  ;;  %v1916_v41 = vld [vmem:[#allocation2 + $0x10f] sm:$0xff] }
 0x151   : > { %4824 = vmatprep.mubr.msk.bf16.mxu1 %vm280_vm2, %v5434_v48  ;;  %v1917_v44 = vpack.c.bf16 %v1916_v41, %v1915_v40  ;;  %v4406_v48 = vld [vmem:[%s6653_s3 + $0x10] sm:$0x3] }
 0x152   : > { %v3286_v24 = vsel %vm1208_vm0, %v4406_v48, 0 }
 0x157   : > { %4859 = vmatmul.mubr.msk.bf16.gmra.mxu0 %vm280_vm2, %v1912_v35 }
 0x158   : > { %4825 = vmatmul.mubr.msk.bf16.gmra.mxu1 %vm280_vm2, %v5432_v47  ;;  %4862 = vmatprep.mubr.msk.bf16.mxu0 %vm280_vm2, %v1913_v36  ;;  %v3024_v47 = vsel %vm1208_vm0, %v5478_v25, 0 }
 0x159   : > { %4828 = vmatprep.mubr.msk.bf16.mxu1 %vm280_vm2, %v5444_v53  ;;  %v2755_v53 = vld [vmem:[#allocation2 + $0x19] sm:$0xff] }
 0x15f   : > { %4863 = vmatmul.mubr.msk.bf16.gmra.mxu0 %vm280_vm2, %v1917_v44 }
 0x160   : > { %4829 = vmatmul.mubr.msk.bf16.gmra.mxu1 %vm280_vm2, %v1587_v43  ;;  %4902 = vmatprep.mubr.msk.bf16.mxu0 %vm280_vm2, %v5456_v60 }
 0x161   : > { %4868 = vmatprep.mubr.msk.bf16.mxu1 %vm280_vm2, %v1898_v45  ;;  %v2770_v45 = vld [vmem:[#allocation2 + $0x91] sm:$0xff] }
 0x167   : > { %4903 = vmatmul.mubr.msk.bf16.vlgmr.msra.gmra.mxu0 %vm280_vm2, %v5458_v62 }
 0x168   : > { %4869 = vmatmul.mubr.msk.bf16.vlgmr.msra.gmra.mxu1 %vm280_vm2, %v5446_v54  ;;  %4906 = vmatprep.mubr.msk.bf16.mxu0 %vm280_vm2, %v5486_v2  ;;  %v2756_v54 = vld [vmem:[#allocation2 + $0x21] sm:$0xff] }
 0x169   : > { %4935 = vmatpush3.bf16.msra.mxu1 %v2857_v46  ;;  %4872 = vmatprep.mubr.msk.bf16.mxu1 %vm280_vm2, %v5456_v60  ;;  %v2786_v58 = vpack.c.bf16 %v2756_v54, %v2755_v53  ;;  %v2758_v60 = vld [vmem:[#allocation2 + $0x31] sm:$0xff] }
 0x16a   : > { %4969 = vmatpush3.bf16.msra.mxu0 %v3024_v47  ;;  %5080 = vmatprep.subr.msk.bf16.mxu1 %vm1208_vm0, %v4406_v48  ;;  %v5611_v0 = vpack.c.bf16 %v2758_v60, %v2757_v63  ;;  %v2771_v47 = vld [vmem:[#allocation2 + $0x99] sm:$0xff]  ;;  %v2772_v48 = vld [vmem:[#allocation2 + $0xa1] sm:$0xff] }
 0x16f   : > { %4907 = vmatmul.mubr.msk.bf16.gmra.mxu0 %vm280_vm2, %v5488_v4 }
 0x170   : > { %4873 = vmatmul.mubr.msk.bf16.gmra.mxu1 %vm280_vm2, %v5458_v62  ;;  %4910 = vmatprep.mubr.msk.bf16.mxu0 %vm280_vm2, %v5498_v7  ;;  %v2760_v62 = vld [vmem:[#allocation2 + $0x41] sm:$0xff] }
 0x171   : > { %4876 = vmatprep.mubr.msk.bf16.mxu1 %vm280_vm2, %v5486_v2  ;;  %v5615_v26 = vpack.c.bf16 %v2760_v62, %v2759_v61 }
 0x177   : > { %4911 = vmatmul.mubr.msk.bf16.gmra.mxu0 %vm280_vm2, %v5500_v9 }
 0x178   : > { %4877 = vmatmul.mubr.msk.bf16.gmra.mxu1 %vm280_vm2, %v5488_v4  ;;  %4914 = vmatprep.mubr.msk.bf16.mxu0 %vm280_vm2, %v5510_v14 }
 0x179   : > { %4880 = vmatprep.mubr.msk.bf16.mxu1 %vm280_vm2, %v5498_v7  ;;  %v2763_v7 = vld [vmem:[#allocation2 + $0x59] sm:$0xff] }
 0x17a   : > { %v5635_v16 = vpack.c.bf16 %v2764_v8, %v2763_v7 }
 0x17f   : > { %4915 = vmatmul.mubr.msk.bf16.gmra.mxu0 %vm280_vm2, %v5512_v15 }
 0x180   : > { %4881 = vmatmul.mubr.msk.bf16.gmra.mxu1 %vm280_vm2, %v5500_v9  ;;  %4918 = vmatprep.mubr.msk.bf16.mxu0 %vm280_vm2, %v5522_v19 }
 0x181   : > { %4884 = vmatprep.mubr.msk.bf16.mxu1 %vm280_vm2, %v5510_v14 }
 0x187   : > { %4919 = vmatmul.mubr.msk.bf16.gmra.mxu0 %vm280_vm2, %v5524_v20 }
 0x188   : > { %4885 = vmatmul.mubr.msk.bf16.gmra.mxu1 %vm280_vm2, %v5512_v15  ;;  %4922 = vmatprep.mubr.msk.bf16.mxu0 %vm280_vm2, %v1910_v29 }
 0x189   : > { %4888 = vmatprep.mubr.msk.bf16.mxu1 %vm280_vm2, %v5522_v19 }
 0x18f   : > { %4923 = vmatmul.mubr.msk.bf16.gmra.mxu0 %vm280_vm2, %v1911_v30 }
 0x190   : > { %4889 = vmatmul.mubr.msk.bf16.gmra.mxu1 %vm280_vm2, %v5524_v20  ;;  %4926 = vmatprep.mubr.msk.bf16.mxu0 %vm280_vm2, %v1912_v35 }
 0x191   : > { %4892 = vmatprep.mubr.msk.bf16.mxu1 %vm280_vm2, %v1910_v29  ;;  %v2768_v29 = vld [vmem:[#allocation2 + $0x81] sm:$0xff] }
 0x192   : > { %v5655_v37 = vpack.c.bf16 %v2768_v29, %v2767_v28  ;;  %v2779_v29 = vld [vmem:[#allocation2 + $0xd9] sm:$0xff] }
 0x197   : > { %4927 = vmatmul.mubr.msk.bf16.gmra.mxu0 %vm280_vm2, %v1913_v36 }
 0x198   : > { %4893 = vmatmul.mubr.msk.bf16.gmra.mxu1 %vm280_vm2, %v1911_v30  ;;  %4930 = vmatprep.mubr.msk.bf16.mxu0 %vm280_vm2, %v1917_v44  ;;  %v2769_v44 = vld [vmem:[#allocation2 + $0x89] sm:$0xff] }
 0x199   : > { %4896 = vmatprep.mubr.msk.bf16.mxu1 %vm280_vm2, %v1912_v35  ;;  %v5669_v52 = vpack.c.bf16 %v2770_v45, %v2769_v44 }
 0x19f   : > { %4931 = vmatmul.mubr.msk.bf16.gmra.mxu0 %vm280_vm2, %v2346_v56  ;;  %v5675_v56 = vpack.c.bf16 %v2772_v48, %v2771_v47 }
 0x1a0   : > { %4897 = vmatmul.mubr.msk.bf16.gmra.mxu1 %vm280_vm2, %v1913_v36  ;;  %4970 = vmatprep.mubr.msk.bf16.mxu0 %vm280_vm2, %v2785_v57 }
 0x1a1   : > { %4936 = vmatprep.mubr.msk.bf16.mxu1 %vm280_vm2, %v2786_v58 }
 0x1a7   : > { %v4768_v25 = vpop.f32.mrf.mxu0  ;;  %4971 = vmatmul.mubr.msk.bf16.vlgmr.msra.gmra.mxu0 %vm280_vm2, %v2786_v58 }
 0x1a8   : > { %v4734_v1 = vpop.f32.mrf.mxu1  ;;  %4937 = vmatmul.mubr.msk.bf16.vlgmr.msra.gmra.mxu1 %vm280_vm2, %v5611_v0  ;;  %4974 = vmatprep.mubr.msk.bf16.mxu0 %vm280_vm2, %v5611_v0 }
 0x1a9   : > { %v5621_v55 = vadd.f32 %v4768_v25, %v4734_v1  ;;  %5003 = vmatpush3.bf16.msra.mxu1 %v3286_v24  ;;  %v1413_v2 = vpop.f32.mrf.mxu0  ;;  %4940 = vmatprep.mubr.msk.bf16.mxu1 %vm280_vm2, %v5615_v26  ;;  %v2773_v24 = vld [vmem:[#allocation2 + $0xa9] sm:$0xff]  ;;  %v2774_v25 = vld [vmem:[#allocation2 + $0xb1] sm:$0xff] }
 0x1aa   : > { %v1246_v3 = vpop.f32.mrf.mxu1  ;;  %v5689_v7 = vpack.c.bf16 %v2774_v25, %v2773_v24 }
 0x1ab   : > { %v5625_v4 = vadd.f32 %v1413_v2, %v1246_v3  ;;  %v4769_v59 = vpop.f32.mrf.mxu0  ;;  %v2775_v2 = vld [vmem:[#allocation2 + $0xb9] sm:$0xff]  ;;  %v2776_v3 = vld [vmem:[#allocation2 + $0xc1] sm:$0xff] }
 0x1ac   : > { %v4735_v6 = vpop.f32.mrf.mxu1  ;;  %v5695_v11 = vpack.c.bf16 %v2776_v3, %v2775_v2 }
 0x1ad   : > { %v5627_v9 = vadd.f32 %v4769_v59, %v4735_v6  ;;  %v1416_v10 = vpop.f32.mrf.mxu0 }
 0x1ae   : > { %v1249_v12 = vpop.f32.mrf.mxu1 }
 0x1af   : > { %v5631_v14 = vadd.f32 %v1416_v10, %v1249_v12  ;;  %v4772_v15 = vpop.f32.mrf.mxu0  ;;  %4975 = vmatmul.mubr.msk.bf16.gmra.mxu0 %vm280_vm2, %v5615_v26 }
 0x1b0   : > { %v4738_v17 = vpop.f32.mrf.mxu1  ;;  %4941 = vmatmul.mubr.msk.bf16.gmra.mxu1 %vm280_vm2, %v5629_v13  ;;  %4978 = vmatprep.mubr.msk.bf16.mxu0 %vm280_vm2, %v5629_v13 }
 0x1b1   : > { %v5641_v18 = vadd.f32 %v4772_v15, %v4738_v17  ;;  %v1429_v27 = vpop.f32.mrf.mxu0  ;;  %4944 = vmatprep.mubr.msk.bf16.mxu1 %vm280_vm2, %v5635_v16 }
 0x1b2   : > { %v1262_v19 = vpop.f32.mrf.mxu1 }
 0x1b3   : > { %v5645_v20 = vadd.f32 %v1429_v27, %v1262_v19  ;;  %v4773_v21 = vpop.f32.mrf.mxu0 }
 0x1b4   : > { %v4739_v23 = vpop.f32.mrf.mxu1 }
 0x1b5   : > { %v5647_v30 = vadd.f32 %v4773_v21, %v4739_v23  ;;  %v1432_v31 = vpop.f32.mrf.mxu0  ;;  %v2778_v23 = vld [vmem:[#allocation2 + $0xd1] sm:$0xff] }
 0x1b6   : > { %v1265_v33 = vpop.f32.mrf.mxu1 }
 0x1b7   : > { %v5651_v35 = vadd.f32 %v1432_v31, %v1265_v33  ;;  %v4776_v36 = vpop.f32.mrf.mxu0  ;;  %4979 = vmatmul.mubr.msk.bf16.gmra.mxu0 %vm280_vm2, %v5635_v16  ;;  %v2780_v31 = vld [vmem:[#allocation2 + $0xe1] sm:$0xff] }
 0x1b8   : > { %v4742_v38 = vpop.f32.mrf.mxu1  ;;  %4945 = vmatmul.mubr.msk.bf16.gmra.mxu1 %vm280_vm2, %v5649_v34  ;;  %4982 = vmatprep.mubr.msk.bf16.mxu0 %vm280_vm2, %v5649_v34 }
 0x1b9   : > { %v5661_v39 = vadd.f32 %v4776_v36, %v4742_v38  ;;  %v1445_v40 = vpop.f32.mrf.mxu0  ;;  %4948 = vmatprep.mubr.msk.bf16.mxu1 %vm280_vm2, %v5655_v37  ;;  %v5713_v38 = vpack.c.bf16 %v2778_v23, %v2777_v22 }
 0x1ba   : > { %v1278_v41 = vpop.f32.mrf.mxu1 }
 0x1bb   : > { %v5665_v42 = vadd.f32 %v1445_v40, %v1278_v41  ;;  %v4777_v43 = vpop.f32.mrf.mxu0  ;;  %v5717_v41 = vpack.c.bf16 %v2780_v31, %v2779_v29 }
 0x1bc   : > { %v4743_v46 = vpop.f32.mrf.mxu1 }
 0x1bd   : > { %v5667_v49 = vadd.f32 %v4777_v43, %v4743_v46  ;;  %v1448_v50 = vpop.f32.mrf.mxu0 }
 0x1be   : > { %v1281_v51 = vpop.f32.mrf.mxu1 }
 0x1bf   : > { %v5671_v53 = vadd.f32 %v1448_v50, %v1281_v51  ;;  %v4780_v54 = vpop.f32.mrf.mxu0  ;;  %4983 = vmatmul.mubr.msk.bf16.gmra.mxu0 %vm280_vm2, %v5655_v37  ;;  %v2781_v50 = vld [vmem:[#allocation2 + $0xe9] sm:$0xff]  ;;  %v2782_v51 = vld [vmem:[#allocation2 + $0xf1] sm:$0xff] }
 0x1c0   : > { %v4746_v57 = vpop.f32.mrf.mxu1  ;;  %4949 = vmatmul.mubr.msk.bf16.gmra.mxu1 %vm280_vm2, %v5669_v52  ;;  %4986 = vmatprep.mubr.msk.bf16.mxu0 %vm280_vm2, %v5669_v52  ;;  %v5735_v25 = vpack.c.bf16 %v2782_v51, %v2781_v50 }
 0x1c1   : > { %v5681_v58 = vadd.f32 %v4780_v54, %v4746_v57  ;;  %v1461_v60 = vpop.f32.mrf.mxu0  ;;  %4952 = vmatprep.mubr.msk.bf16.mxu1 %vm280_vm2, %v5675_v56  ;;  %v2783_v57 = vld [vmem:[#allocation2 + $0xf9] sm:$0xff] }
 0x1c2   : > { %v1294_v61 = vpop.f32.mrf.mxu1 }
 0x1c3   : > { %v5685_v62 = vadd.f32 %v1461_v60, %v1294_v61  ;;  %v4781_v63 = vpop.f32.mrf.mxu0  ;;  %v2784_v60 = vld [vmem:[#allocation2 + $0x101] sm:$0xff] }
 0x1c4   : > { %v4747_v1 = vpop.f32.mrf.mxu1  ;;  %v5739_v2 = vpack.c.bf16 %v2784_v60, %v2783_v57 }
 0x1c5   : > { %v5687_v59 = vadd.f32 %v4781_v63, %v4747_v1  ;;  %v1464_v5 = vpop.f32.mrf.mxu0 }
 0x1c6   : > { %v1297_v6 = vpop.f32.mrf.mxu1 }
 0x1c7   : > { %v5691_v8 = vadd.f32 %v1464_v5, %v1297_v6  ;;  %v4784_v10 = vpop.f32.mrf.mxu0  ;;  %4987 = vmatmul.mubr.msk.bf16.gmra.mxu0 %vm280_vm2, %v5675_v56 }
 0x1c8   : > { %v4750_v12 = vpop.f32.mrf.mxu1  ;;  %4953 = vmatmul.mubr.msk.bf16.gmra.mxu1 %vm280_vm2, %v5689_v7  ;;  %4990 = vmatprep.mubr.msk.bf16.mxu0 %vm280_vm2, %v5689_v7 }
 0x1c9   : > { %v5701_v15 = vadd.f32 %v4784_v10, %v4750_v12  ;;  %v1477_v17 = vpop.f32.mrf.mxu0  ;;  %4956 = vmatprep.mubr.msk.bf16.mxu1 %vm280_vm2, %v5695_v11 }
 0x1ca   : > { %v1310_v27 = vpop.f32.mrf.mxu1 }
 0x1cb   : > { %v5705_v19 = vadd.f32 %v1477_v17, %v1310_v27  ;;  %v4785_v21 = vpop.f32.mrf.mxu0  ;;  %v2803_v27 = vld [vmem:[#allocation2 + $0x109] sm:$0xff] }
 0x1cc   : > { %v4751_v28 = vpop.f32.mrf.mxu1 }
 0x1cd   : > { %v5707_v32 = vadd.f32 %v4785_v21, %v4751_v28  ;;  %v5709_v33 = vpop.f32.mrf.mxu0  ;;  %v2804_v21 = vld [vmem:[#allocation2 + $0x111] sm:$0xff] }
 0x1ce   : > { %v5711_v36 = vpop.f32.mrf.mxu1  ;;  %v5757_v31 = vpack.c.bf16 %v2804_v21, %v2803_v27 }
 0x1cf   : > { %v4788_v40 = vpop.f32.mrf.mxu0  ;;  %4991 = vmatmul.mubr.msk.bf16.gmra.mxu0 %vm280_vm2, %v5695_v11 }
 0x1d0   : > { %v4754_v43 = vpop.f32.mrf.mxu1  ;;  %4957 = vmatmul.mubr.msk.bf16.gmra.mxu1 %vm280_vm2, %v5713_v38  ;;  %4994 = vmatprep.mubr.msk.bf16.mxu0 %vm280_vm2, %v5713_v38 }
 0x1d1   : > { %v5723_v44 = vadd.f32 %v4788_v40, %v4754_v43  ;;  %v1493_v45 = vpop.f32.mrf.mxu0  ;;  %4960 = vmatprep.mubr.msk.bf16.mxu1 %vm280_vm2, %v5717_v41 }
 0x1d2   : > { %v1326_v46 = vpop.f32.mrf.mxu1 }
 0x1d3   : > { %v5727_v47 = vadd.f32 %v1493_v45, %v1326_v46  ;;  %v4789_v48 = vpop.f32.mrf.mxu0 }
 0x1d4   : > { %v4755_v54 = vpop.f32.mrf.mxu1 }
 0x1d5   : > { %v5729_v61 = vadd.f32 %v4789_v48, %v4755_v54  ;;  %v5731_v63 = vpop.f32.mrf.mxu0 }
 0x1d6   : > { %v5733_v24 = vpop.f32.mrf.mxu1 }
 0x1d7   : > { %v4792_v1 = vpop.f32.mrf.mxu0  ;;  %4995 = vmatmul.mubr.msk.bf16.gmra.mxu0 %vm280_vm2, %v5717_v41 }
 0x1d8   : > { %v4758_v3 = vpop.f32.mrf.mxu1  ;;  %4961 = vmatmul.mubr.msk.bf16.gmra.mxu1 %vm280_vm2, %v5735_v25  ;;  %4998 = vmatprep.mubr.msk.bf16.mxu0 %vm280_vm2, %v5735_v25 }
 0x1d9   : > { %v5745_v5 = vadd.f32 %v4792_v1, %v4758_v3  ;;  %v1509_v6 = vpop.f32.mrf.mxu0  ;;  %4964 = vmatprep.mubr.msk.bf16.mxu1 %vm280_vm2, %v5739_v2 }
 0x1da   : > { %v1342_v10 = vpop.f32.mrf.mxu1 }
 0x1db   : > { %v5749_v12 = vadd.f32 %v1509_v6, %v1342_v10  ;;  %v4793_v17 = vpop.f32.mrf.mxu0 }
 0x1dc   : > { %v4759_v22 = vpop.f32.mrf.mxu1 }
 0x1dd   : > { %v5751_v23 = vadd.f32 %v4793_v17, %v4759_v22  ;;  %v5753_v28 = vpop.f32.mrf.mxu0 }
 0x1de   : > { %v5755_v29 = vpop.f32.mrf.mxu1 }
 0x1df   : > { %v4796_v40 = vpop.f32.mrf.mxu0  ;;  %4999 = vmatmul.mubr.msk.bf16.gmra.mxu0 %vm280_vm2, %v5739_v2 }
 0x1e0   : > { %v4762_v43 = vpop.f32.mrf.mxu1  ;;  %4965 = vmatmul.mubr.msk.bf16.gmra.mxu1 %vm280_vm2, %v5757_v31 }
 0x1e1   : > { %v5763_v45 = vadd.f32 %v4796_v40, %v4762_v43  ;;  %v1525_v46 = vpop.f32.mrf.mxu0  ;;  %5004 = vmatprep.mubr.msk.bf16.mxu1 %vm280_vm2, %v5611_v0 }
 0x1e2   : > { %v1358_v48 = vpop.f32.mrf.mxu1 }
 0x1e3   : > { %v5767_v50 = vadd.f32 %v1525_v46, %v1358_v48  ;;  %v4797_v51 = vpop.f32.mrf.mxu0 }
 0x1e4   : > { %v4763_v54 = vpop.f32.mrf.mxu1 }
 0x1e5   : > { %v5769_v57 = vadd.f32 %v4797_v51, %v4763_v54  ;;  %v5771_v60 = vpop.f32.mrf.mxu0 }
 0x1e6   : > { %v5773_v1 = vpop.f32.mrf.mxu1 }
 0x1e7   : > { %v5775_v3 = vpop.f32.mrf.mxu0 }
 0x1e8   : > { %v4802_v6 = vpop.f32.mrf.mxu1  ;;  %5005 = vmatmul.mubr.msk.bf16.vlgmr.msra.gmra.mxu1 %vm280_vm2, %v5615_v26 }
 0x1e9   : > { %v5780_v10 = vadd.f32 %v4802_v6, %v5621_v55  ;;  %v5782_v0 = vpop.f32.mrf.mxu0  ;;  %5008 = vmatprep.mubr.msk.bf16.mxu1 %vm280_vm2, %v5629_v13 }
 0x1ea   : > { %v1675_v17 = vpop.f32.mrf.mxu1 }
 0x1eb   : > { %v5787_v27 = vadd.f32 %v1675_v17, %v5625_v4  ;;  %v5789_v21 = vpop.f32.mrf.mxu0 }
 0x1ec   : > { %v4803_v22 = vpop.f32.mrf.mxu1 }
 0x1ed   : > { %v5792_v40 = vadd.f32 %v4803_v22, %v5627_v9  ;;  %v5794_v43 = vpop.f32.mrf.mxu0 }
 0x1ee   : > { %v1678_v26 = vpop.f32.mrf.mxu1 }
 0x1ef   : > { %v5797_v55 = vadd.f32 %v1678_v26, %v5631_v14  ;;  %v5799_v46 = vpop.f32.mrf.mxu0 }
 0x1f0   : > { %v4806_v48 = vpop.f32.mrf.mxu1  ;;  %5009 = vmatmul.mubr.msk.bf16.gmra.mxu1 %vm280_vm2, %v5635_v16 }
 0x1f1   : > { %v5804_v4 = vadd.f32 %v4806_v48, %v5641_v18  ;;  %v5806_v13 = vpop.f32.mrf.mxu0  ;;  %5012 = vmatprep.mubr.msk.bf16.mxu1 %vm280_vm2, %v5649_v34 }
 0x1f2   : > { %v1691_v9 = vpop.f32.mrf.mxu1 }
 0x1f3   : > { %v5811_v51 = vadd.f32 %v1691_v9, %v5645_v20  ;;  %v5813_v14 = vpop.f32.mrf.mxu0  ;;  %v3696_v9 = vld [vmem:[%s6655_s5] sm:$0x3] }
 0x1f4   : > { %v4807_v54 = vpop.f32.mrf.mxu1  ;;  %5081 = vmatprep.subr.msk.bf16.mxu0 %vm1208_vm0, %v3696_v9 }
 0x1f5   : > { %v5816_v6 = vadd.f32 %v4807_v54, %v5647_v30  ;;  %v5818_v17 = vpop.f32.mrf.mxu0 }
 0x1f6   : > { %v1694_v16 = vpop.f32.mrf.mxu1 }
 0x1f7   : > { %v5821_v18 = vadd.f32 %v1694_v16, %v5651_v35  ;;  %v5823_v22 = vpop.f32.mrf.mxu0 }
 0x1f8   : > { %v4810_v26 = vpop.f32.mrf.mxu1  ;;  %5013 = vmatmul.mubr.msk.bf16.gmra.mxu1 %vm280_vm2, %v5655_v37  ;;  %v3753_v37 = vsel %vm1208_vm0, %v3696_v9, 0 }
 0x1f9   : > { %v5828_v20 = vadd.f32 %v4810_v26, %v5661_v39  ;;  %v5830_v34 = vpop.f32.mrf.mxu0  ;;  %5016 = vmatprep.mubr.msk.bf16.mxu1 %vm280_vm2, %v5669_v52  ;;  %5037 = vmatpush3.bf16.msra.mxu0 %v3753_v37 }
 0x1fa   : > { %v1707_v30 = vpop.f32.mrf.mxu1 }
 0x1fb   : > { %v5835_v48 = vadd.f32 %v1707_v30, %v5665_v42  ;;  %v5837_v35 = vpop.f32.mrf.mxu0 }
 0x1fc   : > { %v4811_v54 = vpop.f32.mrf.mxu1 }
 0x1fd   : > { %6658 = vst [vmem:[#allocation3_spill] sm:$0xff] %v5835_v48  ;;  %v5845_v39 = vadd.f32 %v4811_v54, %v5667_v49  ;;  %v5847_v16 = vpop.f32.mrf.mxu0 }
 0x1fe   : > { %v1710_v52 = vpop.f32.mrf.mxu1 }
 0x1ff   : > { %v5850_v42 = vadd.f32 %v1710_v52, %v5671_v53  ;;  %v5852_v26 = vpop.f32.mrf.mxu0 }
 0x200   : > { %v4814_v30 = vpop.f32.mrf.mxu1  ;;  %5017 = vmatmul.mubr.msk.bf16.gmra.mxu1 %vm280_vm2, %v5675_v56 }
 0x201   : > { %6659 = vst [vmem:[#allocation4_spill] sm:$0xff] %v5850_v42  ;;  %v5857_v48 = vadd.f32 %v4814_v30, %v5681_v58  ;;  %v5859_v9 = vpop.f32.mrf.mxu0  ;;  %5020 = vmatprep.mubr.msk.bf16.mxu1 %vm280_vm2, %v5689_v7 }
 0x202   : > { %v1723_v49 = vpop.f32.mrf.mxu1 }
 0x203   : > { %6660 = vst [vmem:[#allocation5_spill] sm:$0xff] %v5857_v48  ;;  %v5864_v54 = vadd.f32 %v1723_v49, %v5685_v62  ;;  %v5866_v53 = vpop.f32.mrf.mxu0 }
 0x204   : > { %v4815_v37 = vpop.f32.mrf.mxu1 }
 0x205   : > { %v5869_v52 = vadd.f32 %v4815_v37, %v5687_v59  ;;  %v5871_v42 = vpop.f32.mrf.mxu0 }
 0x206   : > { %v1726_v56 = vpop.f32.mrf.mxu1 }
 0x207   : > { %v5874_v58 = vadd.f32 %v1726_v56, %v5691_v8  ;;  %v5876_v30 = vpop.f32.mrf.mxu0  ;;  %v1481_v56 = vadd.f32 %v5709_v33, %v5711_v36 }
 0x208   : > { %v4818_v48 = vpop.f32.mrf.mxu1  ;;  %5021 = vmatmul.mubr.msk.bf16.gmra.mxu1 %vm280_vm2, %v5695_v11 }
 0x209   : > { %v5881_v62 = vadd.f32 %v4818_v48, %v5701_v15  ;;  %v5883_v7 = vpop.f32.mrf.mxu0  ;;  %5024 = vmatprep.mubr.msk.bf16.mxu1 %vm280_vm2, %v5713_v38 }
 0x20a   : > { %6662 = vst [vmem:[#allocation7_spill] sm:$0xff] %v5883_v7  ;;  %v1739_v59 = vpop.f32.mrf.mxu1 }
 0x20b   : > { %6661 = vst [vmem:[#allocation6_spill] sm:$0xff] %v5881_v62  ;;  %v5888_v49 = vadd.f32 %v1739_v59, %v5705_v19  ;;  %v5890_v8 = vpop.f32.mrf.mxu0 }
 0x20c   : > { %v4819_v37 = vpop.f32.mrf.mxu1 }
 0x20d   : > { %v5895_v11 = vadd.f32 %v4819_v37, %v5707_v32  ;;  %v5897_v15 = vpop.f32.mrf.mxu0 }
 0x20e   : > { %v1742_v48 = vpop.f32.mrf.mxu1 }
 0x20f   : > { %v5899_v62 = vadd.f32 %v1742_v48, %v1481_v56  ;;  %v5901_v7 = vpop.f32.mrf.mxu0  ;;  %v1497_v56 = vadd.f32 %v5731_v63, %v5733_v24  ;;  %v3218_v63 = vld [vmem:[#allocation2 + $0x121] sm:$0xff] }
 0x210   : > { %v4822_v38 = vpop.f32.mrf.mxu1  ;;  %5025 = vmatmul.mubr.msk.bf16.gmra.mxu1 %vm280_vm2, %v5717_v41 }
 0x211   : > { %v5906_v19 = vadd.f32 %v4822_v38, %v5723_v44  ;;  %v5908_v59 = vpop.f32.mrf.mxu0  ;;  %5028 = vmatprep.mubr.msk.bf16.mxu1 %vm280_vm2, %v5735_v25 }
 0x212   : > { %v1755_v32 = vpop.f32.mrf.mxu1 }
 0x213   : > { %6663 = vst [vmem:[#allocation8_spill] sm:$0xff] %v5906_v19  ;;  %v5913_v33 = vadd.f32 %v1755_v32, %v5727_v47  ;;  %v5915_v36 = vpop.f32.mrf.mxu0 }
 0x214   : > { %v4823_v37 = vpop.f32.mrf.mxu1 }
 0x215   : > { %v5920_v41 = vadd.f32 %v4823_v37, %v5729_v61  ;;  %v5922_v44 = vpop.f32.mrf.mxu0  ;;  %v3217_v61 = vld [vmem:[#allocation2 + $0x119] sm:$0xff]  ;;  %v688_v37 = vlaneseq }
 0x216   : > { %v1758_v48 = vpop.f32.mrf.mxu1 }
 0x217   : > { %6664 = vst [vmem:[#allocation9_spill] sm:$0xff] %v5920_v41  ;;  %v5924_v38 = vadd.f32 %v1758_v48, %v1497_v56  ;;  %v5926_v19 = vpop.f32.mrf.mxu0 }
 0x218   : > { %6666 = vst [vmem:[#allocation11_spill] sm:$0xff] %v5926_v19  ;;  %v4826_v25 = vpop.f32.mrf.mxu1  ;;  %5029 = vmatmul.mubr.msk.bf16.gmra.mxu1 %vm280_vm2, %v5739_v2  ;;  %v3234_v19 = vpack.c.bf16 %v3218_v63, %v3217_v61  ;;  %v1513_v2 = vadd.f32 %v5753_v28, %v5755_v29 }
 0x219   : > { %6665 = vst [vmem:[#allocation10_spill] sm:$0xff] %v5924_v38  ;;  %v5931_v47 = vadd.f32 %v4826_v25, %v5745_v5  ;;  %v5933_v32 = vpop.f32.mrf.mxu0  ;;  %5032 = vmatprep.mubr.msk.bf16.mxu1 %vm280_vm2, %v5757_v31 }
 0x21a   : > { %6668 = vst [vmem:[#allocation13_spill] sm:$0xff] %v5933_v32  ;;  %v1771_v24 = vpop.f32.mrf.mxu1 }
 0x21b   : > { %6667 = vst [vmem:[#allocation12_spill] sm:$0xff] %v5931_v47  ;;  %v5938_v56 = vadd.f32 %v1771_v24, %v5749_v12  ;;  %v5940_v48 = vpop.f32.mrf.mxu0  ;;  %v5949_v47 = vshrl.u32 %v688_v37, 7  ;;  %v1529_v37 = vadd.f32 %v5771_v60, %v5773_v1 }
 0x21c   : > { %v4827_v38 = vpop.f32.mrf.mxu1 }
 0x21d   : > { %v5945_v5 = vadd.f32 %v4827_v38, %v5751_v23  ;;  %v5947_v25 = vpop.f32.mrf.mxu0  ;;  %v691_v23 = vadd.s32 16, %v5949_v47  ;;  %v695_v60 = vadd.s32 48, %v5949_v47 }
 0x21e   : > { %v1774_v31 = vpop.f32.mrf.mxu1 }
 0x21f   : > { %v5951_v32 = vadd.f32 %v1774_v31, %v1513_v2  ;;  %v5953_v41 = vpop.f32.mrf.mxu0  ;;  %v739_v31 = vand.u32 15, %v691_v23 }
 0x220   : > { %6670 = vst [vmem:[#allocation15_spill] sm:$0xff] %v5953_v41  ;;  %v4830_v12 = vpop.f32.mrf.mxu1  ;;  %5033 = vmatmul.mubr.msk.bf16.gmra.mxu1 %vm280_vm2, %v3234_v19 }
 0x221   : > { %6669 = vst [vmem:[#allocation14_spill] sm:$0xff] %v5951_v32  ;;  %v5957_v61 = vadd.f32 %v4830_v12, %v5763_v45  ;;  %v5959_v63 = vpop.f32.mrf.mxu0  ;;  %vm1836_vm3 = vcmp.gt.s32.totalorder %v739_v31, 0 }
 0x222   : > { %6672 = vst [vmem:[#allocation17_spill] sm:$0xff] %v5959_v63  ;;  %v1787_v28 = vpop.f32.mrf.mxu1 }
 0x223   : > { %6671 = vst [vmem:[#allocation16_spill] sm:$0xff] %v5957_v61  ;;  %v5963_v29 = vadd.f32 %v1787_v28, %v5767_v50  ;;  %v5965_v38 = vpop.f32.mrf.mxu0  ;;  %v725_v50 = vand.u32 15, %v5949_v47 }
 0x224   : > { %6674 = vst [vmem:[#allocation19_spill] sm:$0xff] %v5965_v38  ;;  %v4831_v24 = vpop.f32.mrf.mxu1 }
 0x225   : > { %6673 = vst [vmem:[#allocation18_spill] sm:$0xff] %v5963_v29  ;;  %v5970_v2 = vadd.f32 %v4831_v24, %v5769_v57  ;;  %v5972_v19 = vpop.f32.mrf.mxu0  ;;  %vm5980_vm4 = vcmp.gt.s32.totalorder %v725_v50, 0 }
 0x226   : > { %6676 = vst [vmem:[#allocation21_spill] sm:$0xff] %v5972_v19  ;;  %v1790_v45 = vpop.f32.mrf.mxu1  ;;  %v767_v19 = vand.u32 15, %v695_v60 }
 0x227   : > { %6675 = vst [vmem:[#allocation20_spill] sm:$0xff] %v5970_v2  ;;  %v5974_v12 = vadd.f32 %v1790_v45, %v1529_v37  ;;  %v4904_v61 = vpop.f32.mrf.mxu0  ;;  %v693_v37 = vadd.s32 32, %v5949_v47 }
 0x228   : > { %v4870_v63 = vpop.f32.mrf.mxu1  ;;  %vm5999_vm5 = vcmp.gt.s32.totalorder %v767_v19, 0  ;;  %v697_v19 = vadd.s32 64, %v5949_v47 }
 0x229   : > { %6677 = vst [vmem:[#allocation22_spill] sm:$0xff] %v5974_v12  ;;  %v2181_v28 = vadd.f32 %v4870_v63, %v5775_v3  ;;  %v2434_v29 = vpop.f32.mrf.mxu0  ;;  %v753_v41 = vand.u32 15, %v693_v37 }
 0x22a   : > { %v2172_v38 = vpop.f32.mrf.mxu1 }
 0x22b   : > { %v2563_v1 = vadd.f32 %v4904_v61, %v2181_v28  ;;  %v2173_v57 = vadd.f32 %v2172_v38, %v5782_v0  ;;  %v4905_v24 = vpop.f32.mrf.mxu0  ;;  %vm6008_vm6 = vcmp.gt.s32.totalorder %v753_v41, 0 }
 0x22c   : > { %v4871_v23 = vpop.f32.mrf.mxu1 }
 0x22d   : > { %v2659_v45 = vsel %vm1836_vm3, %v2563_v1, 0.0  ;;  %v2561_v12 = vadd.f32 %v2434_v29, %v2173_v57  ;;  %v2184_v3 = vadd.f32 %v4871_v23, %v5789_v21  ;;  %v2437_v63 = vpop.f32.mrf.mxu0 }
 0x22e   : > { %v2175_v31 = vpop.f32.mrf.mxu1  ;;  %v5987_v32 = vadd.f32 %v2659_v45, %v5780_v10 }
 0x22f   : > { %v2657_v0 = vsel %vm5980_vm4, %v2561_v12, 0.0  ;;  %v2564_v61 = vadd.f32 %v4905_v24, %v2184_v3  ;;  %v2176_v38 = vadd.f32 %v2175_v31, %v5794_v43  ;;  %v4908_v50 = vpop.f32.mrf.mxu0  ;;  %v699_v43 = vadd.s32 80, %v5949_v47 }
 0x230   : > { %v4874_v28 = vpop.f32.mrf.mxu1  ;;  %v5993_v1 = vadd.f32 %v2657_v0, %v5787_v27 }
 0x231   : > { %v5996_v21 = vadd.f32 %v2564_v61, %v5792_v40  ;;  %v2562_v29 = vadd.f32 %v2437_v63, %v2176_v38  ;;  %v2197_v60 = vadd.f32 %v4874_v28, %v5799_v46  ;;  %v2450_v10 = vpop.f32.mrf.mxu0  ;;  %v795_v31 = vand.u32 15, %v699_v43 }
 0x232   : > { %v2188_v2 = vpop.f32.mrf.mxu1  ;;  %v781_v28 = vand.u32 15, %v697_v19 }
 0x233   : > { %v6005_v12 = vadd.f32 %v2562_v29, %v5797_v55  ;;  %v2567_v24 = vadd.f32 %v4908_v50, %v2197_v60  ;;  %v2189_v27 = vadd.f32 %v2188_v2, %v5806_v13  ;;  %v4909_v23 = vpop.f32.mrf.mxu0  ;;  %vm6029_vm7 = vcmp.gt.s32.totalorder %v795_v31, 0 }
 0x234   : > { %v4875_v46 = vpop.f32.mrf.mxu1  ;;  %vm6038_vm8 = vcmp.gt.s32.totalorder %v781_v28, 0 }
 0x235   : > { %v2663_v37 = vsel %vm5999_vm5, %v2567_v24, 0.0  ;;  %v2565_v45 = vadd.f32 %v2450_v10, %v2189_v27  ;;  %v2200_v3 = vadd.f32 %v4875_v46, %v5813_v14  ;;  %v2453_v63 = vpop.f32.mrf.mxu0 }
 0x236   : > { %v2191_v55 = vpop.f32.mrf.mxu1  ;;  %v6017_v0 = vadd.f32 %v2663_v37, %v5804_v4 }
 0x237   : > { %v2661_v13 = vsel %vm6008_vm6, %v2565_v45, 0.0  ;;  %v2568_v41 = vadd.f32 %v4909_v23, %v2200_v3  ;;  %v2192_v61 = vadd.f32 %v2191_v55, %v5818_v17  ;;  %v4912_v38 = vpop.f32.mrf.mxu0  ;;  %v703_v17 = vadd.s32 112, %v5949_v47 }
 0x238   : > { %v4878_v50 = vpop.f32.mrf.mxu1  ;;  %v6023_v29 = vadd.f32 %v2661_v13, %v5811_v51  ;;  %v701_v23 = vadd.s32 96, %v5949_v47 }
 0x239   : > { %v6026_v14 = vadd.f32 %v2568_v41, %v5816_v6  ;;  %v2566_v60 = vadd.f32 %v2453_v63, %v2192_v61  ;;  %v2213_v10 = vadd.f32 %v4878_v50, %v5823_v22  ;;  %v2466_v4 = vpop.f32.mrf.mxu0  ;;  %v823_v45 = vand.u32 15, %v703_v17  ;;  %v6688_v61 = vld [vmem:[#allocation3_spill] sm:$0xff] }
 0x23a   : > { %v2204_v2 = vpop.f32.mrf.mxu1  ;;  %v809_v41 = vand.u32 15, %v701_v23 }
 0x23b   : > { %v6035_v43 = vadd.f32 %v2566_v60, %v5821_v18  ;;  %v2571_v24 = vadd.f32 %v4912_v38, %v2213_v10  ;;  %v2205_v51 = vadd.f32 %v2204_v2, %v5830_v34  ;;  %v4913_v27 = vpop.f32.mrf.mxu0  ;;  %vm6059_vm9 = vcmp.gt.s32.totalorder %v823_v45, 0 }
 0x23c   : > { %v4879_v22 = vpop.f32.mrf.mxu1  ;;  %vm6068_vm10 = vcmp.gt.s32.totalorder %v809_v41, 0 }
 0x23d   : > { %v2667_v40 = vsel %vm6029_vm7, %v2571_v24, 0.0  ;;  %v2569_v46 = vadd.f32 %v2466_v4, %v2205_v51  ;;  %v2216_v19 = vadd.f32 %v4879_v22, %v5837_v35  ;;  %v2469_v37 = vpop.f32.mrf.mxu0  ;;  %v6691_v4 = vld [vmem:[#allocation4_spill] sm:$0xff]  ;;  %v705_v51 = vadd.s32 128, %v5949_v47 }
 0x23e   : > { %v2207_v18 = vpop.f32.mrf.mxu1  ;;  %v6047_v3 = vadd.f32 %v2667_v40, %v5828_v20 }
 0x23f   : > { %v2665_v34 = vsel %vm6038_vm8, %v2569_v46, 0.0  ;;  %v2572_v63 = vadd.f32 %v4913_v27, %v2216_v19  ;;  %v2208_v55 = vadd.f32 %v2207_v18, %v5847_v16  ;;  %v4916_v31 = vpop.f32.mrf.mxu0  ;;  %v707_v16 = vadd.s32 144, %v5949_v47  ;;  %v6694_v19 = vld [vmem:[#allocation5_spill] sm:$0xff] }
 0x240   : > { %v4882_v13 = vpop.f32.mrf.mxu1  ;;  %v6053_v38 = vadd.f32 %v2665_v34, %v6688_v61 }
 0x241   : > { %v6056_v35 = vadd.f32 %v2572_v63, %v5845_v39  ;;  %v2570_v50 = vadd.f32 %v2469_v37, %v2208_v55  ;;  %v2229_v28 = vadd.f32 %v4882_v13, %v5852_v26  ;;  %v2482_v20 = vpop.f32.mrf.mxu0  ;;  %v851_v46 = vand.u32 15, %v707_v16 }
 0x242   : > { %v2220_v10 = vpop.f32.mrf.mxu1  ;;  %v837_v55 = vand.u32 15, %v705_v51  ;;  %v6702_v51 = vld [vmem:[#allocation6_spill] sm:$0xff] }
 0x243   : > { %v6065_v57 = vadd.f32 %v2570_v50, %v6691_v4  ;;  %v2575_v2 = vadd.f32 %v4916_v31, %v2229_v28  ;;  %v2221_v17 = vadd.f32 %v2220_v10, %v5859_v9  ;;  %v4917_v24 = vpop.f32.mrf.mxu0  ;;  %vm6089_vm11 = vcmp.gt.s32.totalorder %v851_v46, 0 }
 0x244   : > { %v4883_v26 = vpop.f32.mrf.mxu1  ;;  %vm6098_vm12 = vcmp.gt.s32.totalorder %v837_v55, 0  ;;  %v709_v4 = vadd.s32 160, %v5949_v47  ;;  %v713_v50 = vadd.s32 192, %v5949_v47 }
 0x245   : > { %v2671_v27 = vsel %vm6059_vm9, %v2575_v2, 0.0  ;;  %v2573_v6 = vadd.f32 %v2482_v20, %v2221_v17  ;;  %v2232_v22 = vadd.f32 %v4883_v26, %v5866_v53  ;;  %v2485_v23 = vpop.f32.mrf.mxu0 }
 0x246   : > { %v2223_v40 = vpop.f32.mrf.mxu1  ;;  %v6077_v37 = vadd.f32 %v2671_v27, %v6694_v19  ;;  %v865_v19 = vand.u32 15, %v709_v4 }
 0x247   : > { %v2669_v9 = vsel %vm6068_vm10, %v2573_v6, 0.0  ;;  %v2576_v18 = vadd.f32 %v4917_v24, %v2232_v22  ;;  %v2224_v45 = vadd.f32 %v2223_v40, %v5871_v42  ;;  %v4920_v34 = vpop.f32.mrf.mxu0  ;;  %v711_v42 = vadd.s32 176, %v5949_v47 }
 0x248   : > { %v4886_v63 = vpop.f32.mrf.mxu1  ;;  %v6083_v31 = vadd.f32 %v2669_v9, %v5864_v54  ;;  %v6699_v54 = vld [vmem:[#allocation7_spill] sm:$0xff]  ;;  %vm6128_vm14 = vcmp.gt.s32.totalorder %v865_v19, 0 }
 0x249   : > { %v6086_v53 = vadd.f32 %v2576_v18, %v5869_v52  ;;  %v2574_v13 = vadd.f32 %v2485_v23, %v2224_v45  ;;  %v2245_v41 = vadd.f32 %v4886_v63, %v5876_v30  ;;  %v2498_v61 = vpop.f32.mrf.mxu0  ;;  %v879_v26 = vand.u32 15, %v711_v42 }
 0x24a   : > { %v2236_v28 = vpop.f32.mrf.mxu1 }
 0x24b   : > { %6695 = vst [vmem:[#allocation3_spill] sm:$0xff] %v6086_v53  ;;  %v6095_v20 = vadd.f32 %v2574_v13, %v5874_v58  ;;  %v2579_v60 = vadd.f32 %v4920_v34, %v2245_v41  ;;  %v2237_v10 = vadd.f32 %v2236_v28, %v6699_v54  ;;  %v4921_v16 = vpop.f32.mrf.mxu0  ;;  %vm6119_vm13 = vcmp.gt.s32.totalorder %v879_v26, 0 }
 0x24c   : > { %v4887_v30 = vpop.f32.mrf.mxu1 }
 0x24d   : > { %6698 = vst [vmem:[#allocation4_spill] sm:$0xff] %v6095_v20  ;;  %v2675_v2 = vsel %vm6089_vm11, %v2579_v60, 0.0  ;;  %v2577_v17 = vadd.f32 %v2498_v61, %v2237_v10  ;;  %v2248_v24 = vadd.f32 %v4887_v30, %v5890_v8  ;;  %v2501_v39 = vpop.f32.mrf.mxu0 }
 0x24e   : > { %v2239_v58 = vpop.f32.mrf.mxu1  ;;  %v6107_v27 = vadd.f32 %v2675_v2, %v6702_v51  ;;  %v6716_v51 = vld [vmem:[#allocation11_spill] sm:$0xff] }
 0x24f   : > { %v2673_v6 = vsel %vm6098_vm12, %v2577_v17, 0.0  ;;  %v2580_v22 = vadd.f32 %v4921_v16, %v2248_v24  ;;  %v2240_v23 = vadd.f32 %v2239_v58, %v5897_v15  ;;  %v4924_v40 = vpop.f32.mrf.mxu0  ;;  %v715_v15 = vadd.s32 208, %v5949_v47  ;;  %v6711_v16 = vld [vmem:[#allocation8_spill] sm:$0xff]  ;;  %v6714_v58 = vld [vmem:[#allocation9_spill] sm:$0xff] }
 0x250   : > { %6703 = vst [vmem:[#allocation5_spill] sm:$0xff] %v6107_v27  ;;  %v4890_v46 = vpop.f32.mrf.mxu1  ;;  %v6113_v9 = vadd.f32 %v2673_v6, %v5888_v49  ;;  %v893_v24 = vand.u32 15, %v713_v50 }
 0x251   : > { %v6116_v8 = vadd.f32 %v2580_v22, %v5895_v11  ;;  %v2578_v18 = vadd.f32 %v2501_v39, %v2240_v23  ;;  %v2261_v45 = vadd.f32 %v4890_v46, %v5901_v7  ;;  %v2514_v34 = vpop.f32.mrf.mxu0  ;;  %v907_v10 = vand.u32 15, %v715_v15  ;;  %v6719_v46 = vld [vmem:[#allocation10_spill] sm:$0xff] }
 0x252   : > { %6704 = vst [vmem:[#allocation7_spill] sm:$0xff] %v6113_v9  ;;  %v2252_v55 = vpop.f32.mrf.mxu1  ;;  %vm6158_vm0 = vcmp.gt.s32.totalorder %v893_v24, 0  ;;  %v717_v15 = vadd.s32 224, %v5949_v47 }
 0x253   : > { %6705 = vst [vmem:[#allocation6_spill] sm:$0xff] %v6116_v8  ;;  %v6125_v13 = vadd.f32 %v2578_v18, %v5899_v62  ;;  %v2583_v41 = vadd.f32 %v4924_v40, %v2261_v45  ;;  %v2253_v49 = vadd.f32 %v2252_v55, %v5908_v59  ;;  %v4925_v61 = vpop.f32.mrf.mxu0  ;;  %vm6149_vm15 = vcmp.gt.s32.totalorder %v907_v10, 0 }
 0x254   : > { %v4891_v7 = vpop.f32.mrf.mxu1 }
 0x255   : > { %6708 = vst [vmem:[#allocation23_spill] sm:$0xff] %v6125_v13  ;;  %v2679_v28 = vsel %vm6119_vm13, %v2583_v41, 0.0  ;;  %v2581_v42 = vadd.f32 %v2514_v34, %v2253_v49  ;;  %v2264_v60 = vadd.f32 %v4891_v7, %v5915_v36  ;;  %v2517_v54 = vpop.f32.mrf.mxu0 }
 0x256   : > { %v2255_v62 = vpop.f32.mrf.mxu1  ;;  %v6137_v52 = vadd.f32 %v2679_v28, %v6711_v16  ;;  %v6724_v28 = vld [vmem:[#allocation12_spill] sm:$0xff] }
 0x257   : > { %v2677_v59 = vsel %vm6128_vm14, %v2581_v42, 0.0  ;;  %v2584_v30 = vadd.f32 %v4925_v61, %v2264_v60  ;;  %v2256_v4 = vadd.f32 %v2255_v62, %v5922_v44  ;;  %v4928_v2 = vpop.f32.mrf.mxu0  ;;  %v719_v44 = vadd.s32 240, %v5949_v47 }
 0x258   : > { %6712 = vst [vmem:[#allocation8_spill] sm:$0xff] %v6137_v52  ;;  %v4894_v17 = vpop.f32.mrf.mxu1  ;;  %v6143_v39 = vadd.f32 %v2677_v59, %v5913_v33  ;;  %v6721_v33 = vld [vmem:[#allocation13_spill] sm:$0xff]  ;;  %v921_v59 = vand.u32 15, %v717_v15 }
 0x259   : > { %v6146_v36 = vadd.f32 %v2584_v30, %v6714_v58  ;;  %v2582_v26 = vadd.f32 %v2517_v54, %v2256_v4  ;;  %v2277_v6 = vadd.f32 %v4894_v17, %v6716_v51  ;;  %v2530_v22 = vpop.f32.mrf.mxu0  ;;  %v935_v50 = vand.u32 15, %v719_v44  ;;  %v6735_v15 = vld [vmem:[#allocation21_spill] sm:$0xff] }
 0x25a   : > { %6713 = vst [vmem:[#allocation24_spill] sm:$0xff] %v6143_v39  ;;  %v2268_v40 = vpop.f32.mrf.mxu1  ;;  %vm1862_vm3 = vcmp.gt.s32.totalorder %v921_v59, 0 }
 0x25b   : > { %6715 = vst [vmem:[#allocation9_spill] sm:$0xff] %v6146_v36  ;;  %v6155_v19 = vadd.f32 %v2582_v26, %v6719_v46  ;;  %v2587_v18 = vadd.f32 %v4928_v2, %v2277_v6  ;;  %v2269_v45 = vadd.f32 %v2268_v40, %v6721_v33  ;;  %v4929_v34 = vpop.f32.mrf.mxu0  ;;  %v6728_v2 = vld [vmem:[#allocation15_spill] sm:$0xff]  ;;  %vm1864_vm1 = vcmp.gt.s32.totalorder %v935_v50, 0  ;;  %v6729_v26 = vld [vmem:[#allocation14_spill] sm:$0xff]  ;;  %v6738_v50 = vld [vmem:[#allocation20_spill] sm:$0xff] }
 0x25c   : > { %v4895_v55 = vpop.f32.mrf.mxu1  ;;  %v6732_v46 = vld [vmem:[#allocation19_spill] sm:$0xff] }
 0x25d   : > { %6720 = vst [vmem:[#allocation11_spill] sm:$0xff] %v6155_v19  ;;  %v2683_v41 = vsel %vm6149_vm15, %v2587_v18, 0.0  ;;  %v2585_v49 = vadd.f32 %v2530_v22, %v2269_v45  ;;  %v2280_v61 = vadd.f32 %v4895_v55, %v5940_v48  ;;  %v2533_v11 = vpop.f32.mrf.mxu0  ;;  %v6733_v45 = vld [vmem:[#allocation16_spill] sm:$0xff] }
 0x25e   : > { %v2271_v7 = vpop.f32.mrf.mxu1  ;;  %v6167_v42 = vadd.f32 %v2683_v41, %v6724_v28 }
 0x25f   : > { %v2681_v60 = vsel %vm6158_vm0, %v2585_v49, 0.0  ;;  %v2588_v54 = vadd.f32 %v4929_v34, %v2280_v61  ;;  %v2272_v62 = vadd.f32 %v2271_v7, %v5947_v25  ;;  %v4932_v10 = vpop.f32.mrf.mxu0  ;;  %v6731_v25 = vld [vmem:[#allocation17_spill] sm:$0xff] }
 0x260   : > { %6725 = vst [vmem:[#allocation10_spill] sm:$0xff] %v6167_v42  ;;  %v4898_v16 = vpop.f32.mrf.mxu1  ;;  %v6173_v30 = vadd.f32 %v2681_v60, %v5938_v56 }
 0x261   : > { %v6176_v48 = vadd.f32 %v2588_v54, %v5945_v5  ;;  %v2586_v4 = vadd.f32 %v2533_v11, %v2272_v62  ;;  %v2293_v17 = vadd.f32 %v4898_v16, %v6728_v2  ;;  %v2546_v24 = vpop.f32.mrf.mxu0  ;;  %v6736_v11 = vld [vmem:[#allocation18_spill] sm:$0xff] }
 0x262   : > { %6726 = vst [vmem:[#allocation13_spill] sm:$0xff] %v6173_v30  ;;  %v2284_v58 = vpop.f32.mrf.mxu1 }
 0x263   : > { %6727 = vst [vmem:[#allocation12_spill] sm:$0xff] %v6176_v48  ;;  %v6180_v51 = vadd.f32 %v2586_v4, %v6729_v26  ;;  %v2591_v6 = vadd.f32 %v4932_v10, %v2293_v17  ;;  %v2285_v22 = vadd.f32 %v2284_v58, %v6731_v25  ;;  %v4933_v23 = vpop.f32.mrf.mxu0  ;;  %v6740_v10 = vld [vmem:[#allocation22_spill] sm:$0xff] }
 0x264   : > { %v4899_v40 = vpop.f32.mrf.mxu1 }
 0x265   : > { %6730 = vst [vmem:[#allocation15_spill] sm:$0xff] %v6180_v51  ;;  %v2687_v56 = vsel %vm1864_vm1, %v2591_v6, 0.0  ;;  %v2589_v44 = vadd.f32 %v2546_v24, %v2285_v22  ;;  %v2296_v5 = vadd.f32 %v4899_v40, %v6732_v46  ;;  %v2549_v18 = vpop.f32.mrf.mxu0 }
 0x266   : > { %v2287_v33 = vpop.f32.mrf.mxu1  ;;  %v6185_v34 = vadd.f32 %v2687_v56, %v6733_v45 }
 0x267   : > { %v2685_v63 = vsel %vm1862_vm3, %v2589_v44, 0.0  ;;  %v2592_v55 = vadd.f32 %v4933_v23, %v2296_v5  ;;  %v2288_v41 = vadd.f32 %v2287_v33, %v6735_v15  ;;  %v4972_v49 = vpop.f32.mrf.mxu0 }
 0x268   : > { %6734 = vst [vmem:[#allocation14_spill] sm:$0xff] %v6185_v34  ;;  %v4938_v61 = vpop.f32.mrf.mxu1  ;;  %v6189_v7 = vadd.f32 %v2685_v63, %v6736_v11 }
 0x269   : > { %v6192_v28 = vadd.f32 %v2592_v55, %v6738_v50  ;;  %v2590_v60 = vadd.f32 %v2549_v18, %v2288_v41  ;;  %v3060_v54 = vpop.f32.mrf.mxu0 }
 0x26a   : > { %6737 = vst [vmem:[#allocation17_spill] sm:$0xff] %v6189_v7  ;;  %v2893_v62 = vpop.f32.mrf.mxu1 }
 0x26b   : > { %6739 = vst [vmem:[#allocation19_spill] sm:$0xff] %v6192_v28  ;;  %v6195_v16 = vadd.f32 %v2590_v60, %v6740_v10  ;;  %v4973_v4 = vpop.f32.mrf.mxu0 }
 0x26c   : > { %v4939_v59 = vpop.f32.mrf.mxu1 }
 0x26d   : > { %6741 = vst [vmem:[#allocation16_spill] sm:$0xff] %v6195_v16  ;;  %v3063_v24 = vpop.f32.mrf.mxu0 }
 0x26e   : > { %v2896_v2 = vpop.f32.mrf.mxu1 }
 0x26f   : > { %v4976_v6 = vpop.f32.mrf.mxu0 }
 0x270   : > { %v6197_v17 = vpop.f32.mrf.mxu1 }
 0x271   : > { %v6207_v23 = vpop.f32.mrf.mxu0 }
 0x272   : > { %v6199_v58 = vpop.f32.mrf.mxu1 }
 0x273   : > { %v6213_v44 = vpop.f32.mrf.mxu0 }
 0x274   : > { %v6201_v26 = vpop.f32.mrf.mxu1 }
 0x275   : > { %v6219_v18 = vpop.f32.mrf.mxu0 }
 0x276   : > { %v6203_v25 = vpop.f32.mrf.mxu1 }
 0x277   : > { %v6225_v63 = vpop.f32.mrf.mxu0 }
 0x278   : > { %v6205_v22 = vpop.f32.mrf.mxu1 }
 0x279   : > { %v6231_v41 = vpop.f32.mrf.mxu0 }
 0x27a   : > { %v6209_v40 = vpop.f32.mrf.mxu1 }
 0x27b   : > { %v6237_v60 = vpop.f32.mrf.mxu0 }
 0x27c   : > { %v6211_v56 = vpop.f32.mrf.mxu1 }
 0x27d   : > { %v6243_v28 = vpop.f32.mrf.mxu0 }
 0x27e   : > { %v6215_v46 = vpop.f32.mrf.mxu1 }
 0x27f   : > { %v6249_v51 = vpop.f32.mrf.mxu0 }
 0x280   : > { %v6217_v5 = vpop.f32.mrf.mxu1 }
 0x281   : > { %v6255_v42 = vpop.f32.mrf.mxu0 }
 0x282   : > { %v6221_v33 = vpop.f32.mrf.mxu1 }
 0x283   : > { %v6261_v39 = vpop.f32.mrf.mxu0 }
 0x284   : > { %v6223_v45 = vpop.f32.mrf.mxu1 }
 0x286   : > { %v6227_v55 = vpop.f32.mrf.mxu1 }
 0x288   : > { %v6229_v15 = vpop.f32.mrf.mxu1 }
 0x28a   : > { %v6233_v11 = vpop.f32.mrf.mxu1 }
 0x28b   : > { %6742 = vst [vmem:[#allocation21_spill] sm:$0xff] %v6233_v11 }
 0x28c   : > { %v6235_v50 = vpop.f32.mrf.mxu1 }
 0x28d   : > { %6743 = vst [vmem:[#allocation18_spill] sm:$0xff] %v6235_v50 }
 0x28e   : > { %v6239_v10 = vpop.f32.mrf.mxu1 }
 0x28f   : > { %6744 = vst [vmem:[#allocation20_spill] sm:$0xff] %v6239_v10 }
 0x290   : > { %v6241_v16 = vpop.f32.mrf.mxu1 }
 0x291   : > { %6745 = vst [vmem:[#allocation22_spill] sm:$0xff] %v6241_v16 }
 0x292   : > { %v6245_v7 = vpop.f32.mrf.mxu1 }
 0x293   : > { %6746 = vst [vmem:[#allocation25_spill] sm:$0xff] %v6245_v7  ;;  %v6267_v7 = vpop.f32.mrf.mxu0 }
 0x294   : > { %v6247_v34 = vpop.f32.mrf.mxu1 }
 0x295   : > { %6747 = vst [vmem:[#allocation26_spill] sm:$0xff] %v6247_v34 }
 0x296   : > { %v6251_v48 = vpop.f32.mrf.mxu1 }
 0x297   : > { %6748 = vst [vmem:[#allocation27_spill] sm:$0xff] %v6251_v48  ;;  %v6274_v48 = vpop.f32.mrf.mxu0 }
 0x298   : > { %v6253_v30 = vpop.f32.mrf.mxu1  ;;  %6756 = vst [vmem:[#allocation35_spill] sm:$0xff] %v6274_v48  ;;  %v696_v48 = vadd.s32 56, %v5949_v47 }
 0x299   : > { %6749 = vst [vmem:[#allocation28_spill] sm:$0xff] %v6253_v30  ;;  %v692_v30 = vadd.s32 24, %v5949_v47 }
 0x29a   : > { %v6257_v19 = vpop.f32.mrf.mxu1 }
 0x29b   : > { %6750 = vst [vmem:[#allocation29_spill] sm:$0xff] %v6257_v19  ;;  %v3069_v19 = vadd.f32 %v4972_v49, %v4938_v61  ;;  %v746_v10 = vand.u32 15, %v692_v30  ;;  %v6286_v49 = vld [vmem:[%s6654_s4] ss:$0 sm:$0xff] }
 0x29c   : > { %v6259_v36 = vpop.f32.mrf.mxu1 }
 0x29d   : > { %6751 = vst [vmem:[#allocation30_spill] sm:$0xff] %v6259_v36  ;;  %v690_v36 = vadd.s32 8, %v5949_v47  ;;  %vm2724_vm4 = vcmp.lt.s32.totalorder %v746_v10, 15 }
 0x29e   : > { %v6263_v52 = vpop.f32.mrf.mxu1 }
 0x29f   : > { %6752 = vst [vmem:[#allocation31_spill] sm:$0xff] %v6263_v52  ;;  %v3061_v52 = vadd.f32 %v3060_v54, %v2893_v62  ;;  %v732_v20 = vand.u32 15, %v690_v36 }
 0x2a0   : > { %v6265_v13 = vpop.f32.mrf.mxu1 }
 0x2a1   : > { %6753 = vst [vmem:[#allocation32_spill] sm:$0xff] %v6265_v13  ;;  %v6279_v13 = vpop.f32.mrf.mxu0  ;;  %vm6291_vm5 = vcmp.lt.s32.totalorder %v732_v20, 15 }
 0x2a2   : > { %v6269_v34 = vpop.f32.mrf.mxu1 }
 0x2a3   : > { %6754 = vst [vmem:[#allocation33_spill] sm:$0xff] %v6269_v34  ;;  %v3072_v34 = vadd.f32 %v4973_v4, %v4939_v59  ;;  %v6289_v30 = vpop.f32.mrf.mxu0 }
 0x2a4   : > { %v6271_v8 = vpop.f32.mrf.mxu1 }
 0x2a5   : > { %6755 = vst [vmem:[#allocation34_spill] sm:$0xff] %v6271_v8 }
 0x2a6   : > { %v6276_v16 = vpop.f32.mrf.mxu1 }
 0x2a7   : > { %6757 = vst [vmem:[#allocation36_spill] sm:$0xff] %v6276_v16  ;;  %v3064_v16 = vadd.f32 %v3063_v24, %v2896_v2  ;;  %v6303_v2 = vpop.f32.mrf.mxu0 }
 0x2a8   : > { %v5006_v9 = vpop.f32.mrf.mxu1 }
 0x2a9   : > { %v3451_v27 = vadd.f32 %v5006_v9, %v3069_v19 }
 0x2aa   : > { %v3322_v50 = vpop.f32.mrf.mxu1 }
 0x2ab   : > { %v3579_v8 = vadd.f32 %v3451_v27, %v5987_v32  ;;  %v3449_v11 = vadd.f32 %v3322_v50, %v3061_v52  ;;  %v694_v27 = vadd.s32 40, %v5949_v47  ;;  %v3085_v52 = vadd.f32 %v4976_v6, %v6197_v17 }
 0x2ac   : > { %v5007_v53 = vpop.f32.mrf.mxu1 }
 0x2ad   : > { %v3577_v9 = vadd.f32 %v3449_v11, %v5993_v1  ;;  %v3452_v19 = vadd.f32 %v5007_v53, %v3072_v34  ;;  %v3618_v62 = vadd.f32 %v6286_v49, %v3579_v8  ;;  %v774_v1 = vand.u32 15, %v696_v48 }
 0x2ae   : > { %v3325_v32 = vpop.f32.mrf.mxu1  ;;  %v3077_v53 = vadd.f32 %v6207_v23, %v6199_v58  ;;  %v760_v6 = vand.u32 15, %v694_v27  ;;  %v700_v23 = vadd.s32 88, %v5949_v47 }
 0x2af   : > { %v3548_v61 = vsel %vm2724_vm4, %v3452_v19, 0.0  ;;  %v3450_v54 = vadd.f32 %v3325_v32, %v3064_v16  ;;  %v3616_v24 = vadd.f32 %v6286_v49, %v3577_v9  ;;  %v3650_v11 = vmax.f32 %v3618_v62, 0.0 }
 0x2b0   : > { %v3580_v59 = vadd.f32 %v3548_v61, %v5996_v21  ;;  %v5010_v4 = vpop.f32.mrf.mxu1  ;;  %v3088_v21 = vadd.f32 %v6213_v44, %v6201_v26  ;;  %vm6313_vm6 = vcmp.lt.s32.totalorder %v774_v1, 15  ;;  %v6321_v44 = vpop.f32.mrf.mxu0  ;;  %vm6323_vm7 = vcmp.lt.s32.totalorder %v760_v6, 15 }
 0x2b1   : > { %v3546_v20 = vsel %vm6291_vm5, %v3450_v54, 0.0  ;;  %v3455_v34 = vadd.f32 %v5010_v4, %v3085_v52  ;;  %v3648_v32 = vmax.f32 %v3616_v24, 0.0  ;;  %v3101_v62 = vadd.f32 %v6225_v63, %v6205_v22 }
 0x2b2   : > { %v3619_v17 = vadd.f32 %v6286_v49, %v3580_v59  ;;  %v3578_v16 = vadd.f32 %v3546_v20, %v6005_v12  ;;  %v3338_v8 = vpop.f32.mrf.mxu1  ;;  %v3080_v12 = vadd.f32 %v6219_v18, %v6203_v25  ;;  %v802_v18 = vand.u32 15, %v700_v23  ;;  %v6337_v22 = vpop.f32.mrf.mxu0 }
 0x2b3   : > { %v3583_v48 = vadd.f32 %v3455_v34, %v6017_v0  ;;  %v3453_v58 = vadd.f32 %v3338_v8, %v3077_v53  ;;  %v698_v0 = vadd.s32 72, %v5949_v47  ;;  %v3093_v20 = vadd.f32 %v6231_v41, %v6209_v40 }
 0x2b4   : > { %v3651_v50 = vmax.f32 %v3619_v17, 0.0  ;;  %v3617_v10 = vadd.f32 %v6286_v49, %v3578_v16  ;;  %v5011_v19 = vpop.f32.mrf.mxu1  ;;  %vm6347_vm8 = vcmp.lt.s32.totalorder %v802_v18, 15 }
 0x2b5   : > { %v3581_v36 = vadd.f32 %v3453_v58, %v6023_v29  ;;  %v3456_v26 = vadd.f32 %v5011_v19, %v3088_v21  ;;  %v3622_v59 = vadd.f32 %v6286_v49, %v3583_v48  ;;  %v788_v17 = vand.u32 15, %v698_v0 }
 0x2b6   : > { %v3681_v27 = vpack.c.bf16 %v3651_v50, %v3650_v11  ;;  %v3649_v52 = vmax.f32 %v3617_v10, 0.0  ;;  %v3341_v54 = vpop.f32.mrf.mxu1  ;;  %v704_v11 = vadd.s32 120, %v5949_v47  ;;  %v3096_v50 = vadd.f32 %v6243_v28, %v6215_v46  ;;  %v6360_v10 = vpop.f32.mrf.mxu0 }
 0x2b7   : > { %v3552_v25 = vsel %vm6313_vm6, %v3456_v26, 0.0  ;;  %v3454_v29 = vadd.f32 %v3341_v54, %v3080_v12  ;;  %v3620_v63 = vadd.f32 %v6286_v49, %v3581_v36  ;;  %v3654_v48 = vmax.f32 %v3622_v59, 0.0 }
 0x2b8   : > { %v3584_v4 = vadd.f32 %v3552_v25, %v6026_v14  ;;  %v5014_v1 = vpop.f32.mrf.mxu1  ;;  %v3680_v53 = vpack.c.bf16 %v3649_v52, %v3648_v32  ;;  %v3104_v14 = vadd.f32 %v6237_v60, %v6211_v56  ;;  %vm6356_vm9 = vcmp.lt.s32.totalorder %v788_v17, 15 }
 0x2b9   : > { %v3550_v34 = vsel %vm6323_vm7, %v3454_v29, 0.0  ;;  %v3459_v24 = vadd.f32 %v5014_v1, %v3101_v62  ;;  %v3652_v9 = vmax.f32 %v3620_v63, 0.0  ;;  %v702_v26 = vadd.s32 104, %v5949_v47  ;;  %v6373_v29 = vpop.f32.mrf.mxu0 }
 0x2ba   : > { %v3623_v16 = vadd.f32 %v6286_v49, %v3584_v4  ;;  %v3582_v8 = vadd.f32 %v3550_v34, %v6035_v43  ;;  %v3354_v6 = vpop.f32.mrf.mxu1  ;;  %5038 = vmatprep.mubr.msk.bf16.mxu0 %vm280_vm2, %v3680_v53  ;;  %v3117_v0 = vadd.f32 %v6249_v51, %v6217_v5  ;;  %v830_v61 = vand.u32 15, %v704_v11 }
 0x2bb   : > { %v3587_v40 = vadd.f32 %v3459_v24, %v6047_v3  ;;  %v3457_v41 = vadd.f32 %v3354_v6, %v3093_v20  ;;  %5039 = vmatmul.mubr.msk.bf16.vlgmr.msra.gmra.mxu0 %vm280_vm2, %v3681_v27  ;;  %v3109_v54 = vadd.f32 %v6255_v42, %v6221_v33  ;;  %v3120_v4 = vadd.f32 %v6261_v39, %v6223_v45  ;;  %v6393_v63 = vpop.f32.mrf.mxu0 }
 0x2bc   : > { %v3655_v58 = vmax.f32 %v3623_v16, 0.0  ;;  %v3621_v23 = vadd.f32 %v6286_v49, %v3582_v8  ;;  %v5015_v43 = vpop.f32.mrf.mxu1  ;;  %v708_v1 = vadd.s32 152, %v5949_v47  ;;  %vm6385_vm10 = vcmp.lt.s32.totalorder %v830_v61, 15 }
 0x2bd   : > { %v3585_v56 = vadd.f32 %v3457_v41, %v6053_v38  ;;  %v3460_v3 = vadd.f32 %v5015_v43, %v3104_v14  ;;  %v3626_v46 = vadd.f32 %v6286_v49, %v3587_v40  ;;  %v3112_v17 = vadd.f32 %v6267_v7, %v6227_v55  ;;  %v6772_v41 = vld [vmem:[#allocation35_spill] sm:$0xff] }
 0x2be   : > { %v3683_v19 = vpack.c.bf16 %v3655_v58, %v3654_v48  ;;  %v3653_v12 = vmax.f32 %v3621_v23, 0.0  ;;  %v3357_v36 = vpop.f32.mrf.mxu1  ;;  %v706_v45 = vadd.s32 136, %v5949_v47  ;;  %v3133_v21 = vadd.f32 %v6772_v41, %v6229_v15  ;;  %v6773_v58 = vld [vmem:[#allocation3_spill] sm:$0xff]  ;;  %v6409_v15 = vpop.f32.mrf.mxu0 }
 0x2bf   : > { %v3556_v28 = vsel %vm6347_vm8, %v3460_v3, 0.0  ;;  %v3458_v38 = vadd.f32 %v3357_v36, %v3096_v50  ;;  %v3624_v51 = vadd.f32 %v6286_v49, %v3585_v56  ;;  %v3658_v53 = vmax.f32 %v3626_v46, 0.0  ;;  %v6774_v50 = vld [vmem:[#allocation21_spill] sm:$0xff]  ;;  %v6775_v36 = vld [vmem:[#allocation4_spill] sm:$0xff] }
 0x2c0   : > { %v3588_v32 = vadd.f32 %v3556_v28, %v6056_v35  ;;  %v5018_v27 = vpop.f32.mrf.mxu1  ;;  %v3682_v52 = vpack.c.bf16 %v3653_v12, %v3652_v9  ;;  %v816_v35 = vand.u32 15, %v702_v26  ;;  %v858_v55 = vand.u32 15, %v708_v1  ;;  %v6776_v28 = vld [vmem:[#allocation18_spill] sm:$0xff] }
 0x2c1   : > { %v3554_v62 = vsel %vm6356_vm9, %v3458_v38, 0.0  ;;  %v3463_v25 = vadd.f32 %v5018_v27, %v3117_v0  ;;  %v3656_v16 = vmax.f32 %v3624_v51, 0.0  ;;  %v3125_v56 = vadd.f32 %v6279_v13, %v6774_v50  ;;  %v6777_v13 = vld [vmem:[#allocation5_spill] sm:$0xff]  ;;  %v6780_v51 = vld [vmem:[#allocation20_spill] sm:$0xff] }
 0x2c2   : > { %v3627_v5 = vadd.f32 %v6286_v49, %v3588_v32  ;;  %v3586_v18 = vadd.f32 %v3554_v62, %v6065_v57  ;;  %v3370_v59 = vpop.f32.mrf.mxu1  ;;  %5042 = vmatprep.mubr.msk.bf16.mxu0 %vm280_vm2, %v3682_v52  ;;  %vm6395_vm11 = vcmp.lt.s32.totalorder %v816_v35, 15  ;;  %v844_v9 = vand.u32 15, %v706_v45 }
 0x2c3   : > { %v3591_v42 = vadd.f32 %v3463_v25, %v6077_v37  ;;  %v3461_v33 = vadd.f32 %v3370_v59, %v3109_v54  ;;  %5043 = vmatmul.mubr.msk.bf16.gmra.mxu0 %vm280_vm2, %v3683_v19  ;;  %v3136_v38 = vadd.f32 %v6289_v30, %v6776_v28  ;;  %vm6419_vm12 = vcmp.lt.s32.totalorder %v858_v55, 15  ;;  %v6781_v30 = vld [vmem:[#allocation7_spill] sm:$0xff] }
 0x2c4   : > { %v3659_v20 = vmax.f32 %v3627_v5, 0.0  ;;  %v3625_v34 = vadd.f32 %v6286_v49, %v3586_v18  ;;  %v5019_v24 = vpop.f32.mrf.mxu1  ;;  %v712_v25 = vadd.s32 184, %v5949_v47  ;;  %v3128_v5 = vadd.f32 %v6303_v2, %v6780_v51 }
 0x2c5   : > { %v3589_v39 = vadd.f32 %v3461_v33, %v6083_v31  ;;  %v3464_v37 = vadd.f32 %v5019_v24, %v3120_v4  ;;  %v3630_v48 = vadd.f32 %v6286_v49, %v3591_v42  ;;  %vm6428_vm13 = vcmp.lt.s32.totalorder %v844_v9, 15  ;;  %v4997_v4 = vpop.f32.mrf.mxu0 }
 0x2c6   : > { %v3685_v8 = vpack.c.bf16 %v3659_v20, %v3658_v53  ;;  %v3657_v6 = vmax.f32 %v3625_v34, 0.0  ;;  %v3373_v40 = vpop.f32.mrf.mxu1  ;;  %v710_v20 = vadd.s32 168, %v5949_v47  ;;  %v6784_v34 = vld [vmem:[#allocation22_spill] sm:$0xff] }
 0x2c7   : > { %v3560_v7 = vsel %vm6385_vm10, %v3464_v37, 0.0  ;;  %v3462_v31 = vadd.f32 %v3373_v40, %v3112_v17  ;;  %v3628_v19 = vadd.f32 %v6286_v49, %v3589_v39  ;;  %v3662_v52 = vmax.f32 %v3630_v48, 0.0  ;;  %v6785_v39 = vld [vmem:[#allocation6_spill] sm:$0xff] }
 0x2c8   : > { %v3592_v23 = vadd.f32 %v3560_v7, %v6773_v58  ;;  %v5022_v43 = vpop.f32.mrf.mxu1  ;;  %v3684_v11 = vpack.c.bf16 %v3657_v6, %v3656_v16  ;;  %v3149_v57 = vadd.f32 %v6321_v44, %v6784_v34  ;;  %v6786_v6 = vld [vmem:[#allocation25_spill] sm:$0xff]  ;;  %v872_v58 = vand.u32 15, %v710_v20 }
 0x2c9   : > { %v3558_v3 = vsel %vm6395_vm11, %v3462_v31, 0.0  ;;  %v3467_v60 = vadd.f32 %v5022_v43, %v3133_v21  ;;  %v3660_v42 = vmax.f32 %v3628_v19, 0.0  ;;  %v3141_v14 = vadd.f32 %v6337_v22, %v6786_v6  ;;  %v3159_v21 = vpop.f32.mrf.mxu0  ;;  %v6787_v31 = vld [vmem:[#allocation23_spill] sm:$0xff] }
 0x2ca   : > { %v3631_v12 = vadd.f32 %v6286_v49, %v3592_v23  ;;  %v3590_v26 = vadd.f32 %v3558_v3, %v6775_v36  ;;  %v3386_v0 = vpop.f32.mrf.mxu1  ;;  %5046 = vmatprep.mubr.msk.bf16.mxu0 %vm280_vm2, %v3684_v11  ;;  %v6788_v23 = vld [vmem:[#allocation26_spill] sm:$0xff]  ;;  %v6789_v11 = vld [vmem:[#allocation8_spill] sm:$0xff]  ;;  %v6792_v36 = vld [vmem:[#allocation27_spill] sm:$0xff]  ;;  %vm6461_vm15 = vcmp.lt.s32.totalorder %v872_v58, 15 }
 0x2cb   : > { %v3595_v46 = vadd.f32 %v3467_v60, %v6777_v13  ;;  %v3465_v32 = vadd.f32 %v3386_v0, %v3125_v56  ;;  %5047 = vmatmul.mubr.msk.bf16.gmra.mxu0 %vm280_vm2, %v3685_v8  ;;  %v886_v8 = vand.u32 15, %v712_v25  ;;  %v3152_v43 = vadd.f32 %v6360_v10, %v6788_v23  ;;  %v6793_v10 = vld [vmem:[#allocation24_spill] sm:$0xff]  ;;  %v5000_v13 = vpop.f32.mrf.mxu0 }
 0x2cc   : > { %v3663_v61 = vmax.f32 %v3631_v12, 0.0  ;;  %v3629_v54 = vadd.f32 %v6286_v49, %v3590_v26  ;;  %v5023_v62 = vpop.f32.mrf.mxu1  ;;  %v716_v56 = vadd.s32 216, %v5949_v47  ;;  %v3144_v26 = vadd.f32 %v6373_v29, %v6792_v36 }
 0x2cd   : > { %v3593_v18 = vadd.f32 %v3465_v32, %v6781_v30  ;;  %v3468_v59 = vadd.f32 %v5023_v62, %v3136_v38  ;;  %v3634_v17 = vadd.f32 %v6286_v49, %v3595_v46  ;;  %vm6453_vm14 = vcmp.lt.s32.totalorder %v886_v8, 15  ;;  %v6797_v30 = vld [vmem:[#allocation9_spill] sm:$0xff] }
 0x2ce   : > { %v3687_v33 = vpack.c.bf16 %v3663_v61, %v3662_v52  ;;  %v3661_v1 = vmax.f32 %v3629_v54, 0.0  ;;  %v3389_v53 = vpop.f32.mrf.mxu1  ;;  %v714_v38 = vadd.s32 200, %v5949_v47  ;;  %v6796_v54 = vld [vmem:[#allocation28_spill] sm:$0xff]  ;;  %v914_v51 = vand.u32 15, %v716_v56  ;;  %v6811_v52 = vld [vmem:[#allocation15_spill] sm:$0xff] }
 0x2cf   : > { %v3564_v2 = vsel %vm6419_vm12, %v3468_v59, 0.0  ;;  %v3466_v24 = vadd.f32 %v3389_v53, %v3128_v5  ;;  %v3632_v44 = vadd.f32 %v6286_v49, %v3593_v18  ;;  %v3666_v3 = vmax.f32 %v3634_v17, 0.0 }
 0x2d0   : > { %v3596_v37 = vadd.f32 %v3564_v2, %v6785_v39  ;;  %v5026_v45 = vpop.f32.mrf.mxu1  ;;  %v3686_v16 = vpack.c.bf16 %v3661_v1, %v3660_v42  ;;  %v3165_v62 = vadd.f32 %v6393_v63, %v6796_v54  ;;  %v6798_v42 = vld [vmem:[#allocation29_spill] sm:$0xff]  ;;  %v900_v20 = vand.u32 15, %v714_v38  ;;  %v3172_v63 = vpop.f32.mrf.mxu0  ;;  %v6799_v2 = vld [vmem:[#allocation11_spill] sm:$0xff]  ;;  %v6800_v39 = vld [vmem:[#allocation30_spill] sm:$0xff] }
 0x2d1   : > { %v3562_v40 = vsel %vm6428_vm13, %v3466_v24, 0.0  ;;  %v3471_v41 = vadd.f32 %v5026_v45, %v3149_v57  ;;  %v3664_v46 = vmax.f32 %v3632_v44, 0.0  ;;  %v6801_v45 = vld [vmem:[#allocation10_spill] sm:$0xff]  ;;  %vm6482_vm0 = vcmp.lt.s32.totalorder %v914_v51, 15 }
 0x2d2   : > { %v3635_v7 = vadd.f32 %v6286_v49, %v3596_v37  ;;  %v3594_v55 = vadd.f32 %v3562_v40, %v6787_v31  ;;  %v3402_v48 = vpop.f32.mrf.mxu1  ;;  %5050 = vmatprep.mubr.msk.bf16.mxu0 %vm280_vm2, %v3686_v16  ;;  %v3168_v37 = vadd.f32 %v4997_v4, %v6800_v39  ;;  %v720_v44 = vadd.s32 248, %v5949_v47  ;;  %v5001_v23 = vpop.f32.mrf.mxu0  ;;  %v6813_v51 = vld [vmem:[#allocation14_spill] sm:$0xff] }
 0x2d3   : > { %v3599_v22 = vadd.f32 %v3471_v41, %v6789_v11  ;;  %v3469_v50 = vadd.f32 %v3402_v48, %v3141_v14  ;;  %5051 = vmatmul.mubr.msk.bf16.gmra.mxu0 %vm280_vm2, %v3687_v33  ;;  %v3157_v33 = vadd.f32 %v6409_v15, %v6798_v42  ;;  %vm6490_vm1 = vcmp.lt.s32.totalorder %v900_v20, 15 }
 0x2d4   : > { %v3667_v60 = vmax.f32 %v3635_v7, 0.0  ;;  %v3633_v9 = vadd.f32 %v6286_v49, %v3594_v55  ;;  %v5027_v12 = vpop.f32.mrf.mxu1  ;;  %v6804_v7 = vld [vmem:[#allocation31_spill] sm:$0xff]  ;;  %v6805_v55 = vld [vmem:[#allocation13_spill] sm:$0xff]  ;;  %v718_v56 = vadd.s32 232, %v5949_v47  ;;  %v3175_v47 = vpop.f32.mrf.mxu0 }
 0x2d5   : > { %v3597_v0 = vadd.f32 %v3469_v50, %v6793_v10  ;;  %v3472_v28 = vadd.f32 %v5027_v12, %v3152_v43  ;;  %v3638_v5 = vadd.f32 %v6286_v49, %v3599_v22  ;;  %v3160_v31 = vadd.f32 %v3159_v21, %v6804_v7  ;;  %v6809_v12 = vld [vmem:[#allocation12_spill] sm:$0xff] }
 0x2d6   : > { %v3689_v32 = vpack.c.bf16 %v3667_v60, %v3666_v3  ;;  %v3665_v27 = vmax.f32 %v3633_v9, 0.0  ;;  %v3405_v61 = vpop.f32.mrf.mxu1  ;;  %v6808_v3 = vld [vmem:[#allocation32_spill] sm:$0xff] }
 0x2d7   : > { %v3568_v29 = vsel %vm6453_vm14, %v3472_v28, 0.0  ;;  %v3470_v25 = vadd.f32 %v3405_v61, %v3144_v26  ;;  %v3636_v34 = vadd.f32 %v6286_v49, %v3597_v0  ;;  %v3670_v6 = vmax.f32 %v3638_v5, 0.0  ;;  %v6810_v28 = vld [vmem:[#allocation33_spill] sm:$0xff] }
 0x2d8   : > { %v3600_v18 = vadd.f32 %v3568_v29, %v6797_v30  ;;  %v5030_v59 = vpop.f32.mrf.mxu1  ;;  %v3688_v35 = vpack.c.bf16 %v3665_v27, %v3664_v46  ;;  %v3181_v60 = vadd.f32 %v5000_v13, %v6808_v3  ;;  %v942_v0 = vand.u32 15, %v720_v44  ;;  %v6812_v29 = vld [vmem:[#allocation34_spill] sm:$0xff] }
 0x2d9   : > { %v3566_v1 = vsel %vm6461_vm15, %v3470_v25, 0.0  ;;  %v3475_v53 = vadd.f32 %v5030_v59, %v3165_v62  ;;  %v3668_v43 = vmax.f32 %v3636_v34, 0.0  ;;  %v3173_v38 = vadd.f32 %v3172_v63, %v6810_v28  ;;  %v5126_v28 = vld [vmem:[%s5212_s10 + $0x18] sm:$0xff]  }
 0x2da   : > { %v3639_v57 = vadd.f32 %v6286_v49, %v3600_v18  ;;  %v3598_v24 = vadd.f32 %v3566_v1, %v6799_v2  ;;  %v3418_v17 = vpop.f32.mrf.mxu1  ;;  %5054 = vmatprep.mubr.msk.bf16.mxu0 %vm280_vm2, %v3688_v35  ;;  %v928_v62 = vand.u32 15, %v718_v56  ;;  %v3184_v25 = vadd.f32 %v5001_v23, %v6812_v29  ;;  %v6526_v23 = vld [vmem:[%s6656_s6] ss:$0 sm:$0xff] }
 0x2db   : > { %v3603_v16 = vadd.f32 %v3475_v53, %v6801_v45  ;;  %v3473_v15 = vadd.f32 %v3418_v17, %v3157_v33  ;;  %5055 = vmatmul.mubr.msk.bf16.gmra.mxu0 %vm280_vm2, %v3689_v32  ;;  %vm2752_vm3 = vcmp.lt.s32.totalorder %v942_v0, 15  ;;  %v6814_v33 = vld [vmem:[#allocation36_spill] sm:$0xff]  ;;  %v6815_v53 = vld [vmem:[#allocation17_spill] sm:$0xff]  ;;  %v6816_v45 = vld [vmem:[#allocation19_spill] sm:$0xff] }
 0x2dc   : > { %v3671_v14 = vmax.f32 %v3639_v57, 0.0  ;;  %v3637_v40 = vadd.f32 %v6286_v49, %v3598_v24  ;;  %v5031_v41 = vpop.f32.mrf.mxu1  ;;  %v3176_v1 = vadd.f32 %v3175_v47, %v6814_v33  ;;  %vm2750_vm4 = vcmp.lt.s32.totalorder %v928_v62, 15 }
 0x2dd   : > { %v3601_v4 = vadd.f32 %v3473_v15, %v6805_v55  ;;  %v3476_v48 = vadd.f32 %v5031_v41, %v3168_v37  ;;  %v3642_v19 = vadd.f32 %v6286_v49, %v3603_v16 }
 0x2de   : > { %v3691_v11 = vpack.c.bf16 %v3671_v14, %v3670_v6  ;;  %v3669_v22 = vmax.f32 %v3637_v40, 0.0  ;;  %v3421_v50 = vpop.f32.mrf.mxu1  ;;  %v6817_v40 = vld [vmem:[#allocation16_spill] sm:$0xff] }
 0x2df   : > { %v3572_v9 = vsel %vm6482_vm0, %v3476_v48, 0.0  ;;  %v3474_v21 = vadd.f32 %v3421_v50, %v3160_v31  ;;  %v3640_v13 = vadd.f32 %v6286_v49, %v3601_v4  ;;  %v3674_v18 = vmax.f32 %v3642_v19, 0.0  ;;  %v5125_v50 = vld [vmem:[%s5212_s10] sm:$0xff]  }
 0x2e0   : > { %v3604_v36 = vadd.f32 %v3572_v9, %v6809_v12  ;;  %v5034_v26 = vpop.f32.mrf.mxu1  ;;  %v3690_v10 = vpack.c.bf16 %v3669_v22, %v3668_v43  ;;  %v5124_v43 = vld [vmem:[%s5212_s10 + $0x8] sm:$0xff]   ;;  %v3917_v12 = vunpack.c.h.bf16 %v5125_v50 }
 0x2e1   : > { %v3570_v46 = vsel %vm6490_vm1, %v3474_v21, 0.0  ;;  %v3479_v32 = vadd.f32 %v5034_v26, %v3181_v60  ;;  %v3672_v34 = vmax.f32 %v3640_v13, 0.0  ;;  %v3919_v21 = vunpack.c.h.bf16 %v5124_v43 }
 0x2e2   : > { %v3643_v27 = vadd.f32 %v6286_v49, %v3604_v36  ;;  %v3602_v61 = vadd.f32 %v3570_v46, %v6811_v52  ;;  %v3434_v54 = vpop.f32.mrf.mxu1  ;;  %5058 = vmatprep.mubr.msk.bf16.mxu0 %vm280_vm2, %v3690_v10  ;;  %v5127_v52 = vld [vmem:[%s5212_s10 + $0x10] sm:$0xff]  }
 0x2e3   : > { %v3607_v5 = vadd.f32 %v3479_v32, %v6813_v51  ;;  %v3477_v30 = vadd.f32 %v3434_v54, %v3173_v38  ;;  %5059 = vmatmul.mubr.msk.bf16.gmra.mxu0 %vm280_vm2, %v3691_v11  ;;  %v3918_v11 = vunpack.c.l.bf16 %v5124_v43  ;;  %v3922_v38 = vunpack.c.l.bf16 %v5126_v28 }
 0x2e4   : > { %v3675_v59 = vmax.f32 %v3643_v27, 0.0  ;;  %v3641_v35 = vadd.f32 %v6286_v49, %v3602_v61  ;;  %v5035_v42 = vpop.f32.mrf.mxu1  ;;  %v3920_v61 = vunpack.c.l.bf16 %v5127_v52  ;;  %v3921_v33 = vunpack.c.h.bf16 %v5127_v52 }
 0x2e5   : > { %v3605_v20 = vadd.f32 %v3477_v30, %v6815_v53  ;;  %v3480_v63 = vadd.f32 %v5035_v42, %v3184_v25  ;;  %v3646_v37 = vadd.f32 %v6286_v49, %v3607_v5  ;;  %v3923_v5 = vunpack.c.h.bf16 %v5126_v28 }
 0x2e6   : > { %v3693_v57 = vpack.c.bf16 %v3675_v59, %v3674_v18  ;;  %v3673_v2 = vmax.f32 %v3641_v35, 0.0  ;;  %v3437_v24 = vpop.f32.mrf.mxu1 }
 0x2e7   : > { %v3576_v17 = vsel %vm2752_vm3, %v3480_v63, 0.0  ;;  %v3478_v39 = vadd.f32 %v3437_v24, %v3176_v1  ;;  %v3644_v6 = vadd.f32 %v6286_v49, %v3605_v20  ;;  %v3678_v44 = vmax.f32 %v3646_v37, 0.0 }
 0x2e8   : > { %v3608_v16 = vadd.f32 %v3576_v17, %v6816_v45  ;;  %v3692_v15 = vpack.c.bf16 %v3673_v2, %v3672_v34 }
 0x2e9   : > { %v3574_v8 = vsel %vm2750_vm4, %v3478_v39, 0.0  ;;  %v3676_v55 = vmax.f32 %v3644_v6, 0.0 }
 0x2ea   : > { %v3647_v14 = vadd.f32 %v6286_v49, %v3608_v16  ;;  %v3606_v41 = vadd.f32 %v3574_v8, %v6817_v40  ;;  %5062 = vmatprep.mubr.msk.bf16.mxu0 %vm280_vm2, %v3692_v15  ;;  %v5129_v16 = vld [vmem:[%s5212_s10 + $0x20] sm:$0xff]  }
 0x2eb   : > { %5063 = vmatmul.mubr.msk.bf16.gmra.mxu0 %vm280_vm2, %v3693_v57  ;;  %v5128_v57 = vld [vmem:[%s5212_s10 + $0x28] sm:$0xff]   ;;  %v3924_v15 = vunpack.c.l.bf16 %v5129_v16 }
 0x2ec   : > { %v3679_v7 = vmax.f32 %v3647_v14, 0.0  ;;  %v3645_v31 = vadd.f32 %v6286_v49, %v3606_v41  ;;  %v3916_v49 = vunpack.c.l.bf16 %v5125_v50  ;;  %v3926_v2 = vunpack.c.l.bf16 %v5128_v57 }
 0x2ee   : > { %v3695_v4 = vpack.c.bf16 %v3679_v7, %v3678_v44  ;;  %v3677_v48 = vmax.f32 %v3645_v31, 0.0  ;;  %v3927_v44 = vunpack.c.h.bf16 %v5128_v57 }
 0x2f0   : > { %v3694_v58 = vpack.c.bf16 %v3677_v48, %v3676_v55 }
 0x2f2   : > { %5066 = vmatprep.mubr.msk.bf16.mxu0 %vm280_vm2, %v3694_v58  ;;  %v3925_v58 = vunpack.c.h.bf16 %v5129_v16 }
 0x2f3   : > { %5067 = vmatmul.mubr.msk.bf16.gmra.mxu0 %vm280_vm2, %v3695_v4  ;;  %vm4140_vm2 = vcmask 125952  }
 0x37b   : > { %v5040_v22 = vpop.f32.mrf.mxu0 }
 0x37c   : > { %v3798_v56 = vadd.f32 %v5040_v22, %v6526_v23 }
 0x37d   : > { %v3789_v3 = vpop.f32.mrf.mxu0 }
 0x37e   : > { %v3950_v60 = vadd.f32 %v3918_v11, %v3798_v56  ;;  %v3790_v9 = vadd.f32 %v6526_v23, %v3789_v3  ;;  %v5130_v56 = vld [vmem:[%s5212_s10 + $0x38] sm:$0xff]  }
 0x37f   : > { %v5041_v19 = vpop.f32.mrf.mxu0  ;;  %v3930_v3 = vunpack.c.l.bf16 %v5130_v56 }
 0x380   : > { %v3982_v36 = vmax.f32 %v3950_v60, 0.0  ;;  %v3948_v26 = vadd.f32 %v3916_v49, %v3790_v9  ;;  %v3801_v10 = vadd.f32 %v5041_v19, %v6526_v23 }
 0x381   : > { %v3792_v0 = vpop.f32.mrf.mxu0 }
 0x382   : > { %v4479_v46 = vpack.c.bf16 %v3982_v36, %v3982_v36  ;;  %v3980_v32 = vmax.f32 %v3948_v26, 0.0  ;;  %v3951_v47 = vadd.f32 %v3919_v21, %v3801_v10  ;;  %v3793_v13 = vadd.f32 %v6526_v23, %v3792_v0  ;;  %v5131_v36 = vld [vmem:[%s5212_s10 + $0x30] sm:$0xff]  }
 0x383   : > { %v5044_v27 = vpop.f32.mrf.mxu0  ;;  %v3928_v26 = vunpack.c.l.bf16 %v5131_v36 }
 0x384   : > { %4143 = vst.msk [vmem:[%s6538_s18 + $0x8] sm:$0xf] %vm4140_vm2, %v4479_v46  ;;  %v4477_v54 = vpack.c.bf16 %v3980_v32, %v3980_v32  ;;  %v3983_v62 = vmax.f32 %v3951_v47, 0.0  ;;  %v3949_v29 = vadd.f32 %v3917_v12, %v3793_v13  ;;  %v3814_v25 = vadd.f32 %v5044_v27, %v6526_v23 }
 0x385   : > { %v3805_v51 = vpop.f32.mrf.mxu0  ;;  %v3931_v32 = vunpack.c.h.bf16 %v5130_v56 }
 0x386   : > { %4141 = vst.msk [vmem:[%s6538_s18] sm:$0xf] %vm4140_vm2, %v4477_v54  ;;  %v4480_v30 = vpack.c.bf16 %v3983_v62, %v3983_v62  ;;  %v3981_v18 = vmax.f32 %v3949_v29, 0.0  ;;  %v3954_v59 = vadd.f32 %v3922_v38, %v3814_v25  ;;  %v3806_v35 = vadd.f32 %v6526_v23, %v3805_v51 }
 0x387   : > { %v5045_v42 = vpop.f32.mrf.mxu0  ;;  %v3929_v54 = vunpack.c.h.bf16 %v5131_v36 }
 0x388   : > { %4144 = vst.msk [vmem:[%s6538_s18 + $0xc] sm:$0xf] %vm4140_vm2, %v4480_v30  ;;  %v4478_v1 = vpack.c.bf16 %v3981_v18, %v3981_v18  ;;  %v3986_v53 = vmax.f32 %v3954_v59, 0.0  ;;  %v3952_v20 = vadd.f32 %v3920_v61, %v3806_v35  ;;  %v3817_v63 = vadd.f32 %v5045_v42, %v6526_v23  ;;  %v5132_v30 = vld [vmem:[%s5212_s10 + $0x48] sm:$0xff]  }
 0x389   : > { %v3808_v34 = vpop.f32.mrf.mxu0  ;;  %v3934_v18 = vunpack.c.l.bf16 %v5132_v30 }
 0x38a   : > { %4142 = vst.msk [vmem:[%s6538_s18 + $0x4] sm:$0xf] %vm4140_vm2, %v4478_v1  ;;  %v4483_v24 = vpack.c.bf16 %v3986_v53, %v3986_v53  ;;  %v3984_v17 = vmax.f32 %v3952_v20, 0.0  ;;  %v3955_v39 = vadd.f32 %v3923_v5, %v3817_v63  ;;  %v3809_v37 = vadd.f32 %v6526_v23, %v3808_v34  ;;  %v5133_v1 = vld [vmem:[%s5212_s10 + $0x40] sm:$0xff]  }
 0x38b   : > { %v5048_v45 = vpop.f32.mrf.mxu0  ;;  %v3932_v53 = vunpack.c.l.bf16 %v5133_v1 }
 0x38c   : > { %4147 = vst.msk [vmem:[%s6538_s18 + $0x18] sm:$0xf] %vm4140_vm2, %v4483_v24  ;;  %v4481_v8 = vpack.c.bf16 %v3984_v17, %v3984_v17  ;;  %v3987_v6 = vmax.f32 %v3955_v39, 0.0  ;;  %v3953_v14 = vadd.f32 %v3921_v33, %v3809_v37  ;;  %v3830_v40 = vadd.f32 %v5048_v45, %v6526_v23 }
 0x38d   : > { %v3821_v41 = vpop.f32.mrf.mxu0  ;;  %v3935_v17 = vunpack.c.h.bf16 %v5132_v30 }
 0x38e   : > { %4145 = vst.msk [vmem:[%s6538_s18 + $0x10] sm:$0xf] %vm4140_vm2, %v4481_v8  ;;  %v4484_v7 = vpack.c.bf16 %v3987_v6, %v3987_v6  ;;  %v3985_v31 = vmax.f32 %v3953_v14, 0.0  ;;  %v3958_v55 = vadd.f32 %v3926_v2, %v3830_v40  ;;  %v3822_v4 = vadd.f32 %v6526_v23, %v3821_v41 }
 0x38f   : > { %v5049_v48 = vpop.f32.mrf.mxu0 }
 0x390   : > { %4148 = vst.msk [vmem:[%s6538_s18 + $0x1c] sm:$0xf] %vm4140_vm2, %v4484_v7  ;;  %v4482_v43 = vpack.c.bf16 %v3985_v31, %v3985_v31  ;;  %v3990_v11 = vmax.f32 %v3958_v55, 0.0  ;;  %v3956_v22 = vadd.f32 %v3924_v15, %v3822_v4  ;;  %v3833_v50 = vadd.f32 %v5049_v48, %v6526_v23  ;;  %v5134_v7 = vld [vmem:[%s5212_s10 + $0x58] sm:$0xff]  }
 0x391   : > { %v3824_v49 = vpop.f32.mrf.mxu0  ;;  %v3933_v15 = vunpack.c.h.bf16 %v5133_v1  ;;  %v3938_v31 = vunpack.c.l.bf16 %v5134_v7 }
 0x392   : > { %4146 = vst.msk [vmem:[%s6538_s18 + $0x14] sm:$0xf] %vm4140_vm2, %v4482_v43  ;;  %v4487_v60 = vpack.c.bf16 %v3990_v11, %v3990_v11  ;;  %v3988_v9 = vmax.f32 %v3956_v22, 0.0  ;;  %v3959_v21 = vadd.f32 %v3927_v44, %v3833_v50  ;;  %v3825_v19 = vadd.f32 %v6526_v23, %v3824_v49  ;;  %v5135_v11 = vld [vmem:[%s5212_s10 + $0x50] sm:$0xff]  }
 0x393   : > { %v5052_v12 = vpop.f32.mrf.mxu0  ;;  %v3936_v22 = vunpack.c.l.bf16 %v5135_v11 }
 0x394   : > { %4151 = vst.msk [vmem:[%s6538_s18 + $0x28] sm:$0xf] %vm4140_vm2, %v4487_v60  ;;  %v4485_v10 = vpack.c.bf16 %v3988_v9, %v3988_v9  ;;  %v3991_v0 = vmax.f32 %v3959_v21, 0.0  ;;  %v3957_v28 = vadd.f32 %v3925_v58, %v3825_v19  ;;  %v3846_v38 = vadd.f32 %v5052_v12, %v6526_v23 }
 0x395   : > { %v3837_v46 = vpop.f32.mrf.mxu0  ;;  %v3939_v9 = vunpack.c.h.bf16 %v5134_v7 }
 0x396   : > { %4149 = vst.msk [vmem:[%s6538_s18 + $0x20] sm:$0xf] %vm4140_vm2, %v4485_v10  ;;  %v4488_v47 = vpack.c.bf16 %v3991_v0, %v3991_v0  ;;  %v3989_v13 = vmax.f32 %v3957_v28, 0.0  ;;  %v3962_v27 = vadd.f32 %v3930_v3, %v3846_v38  ;;  %v3838_v52 = vadd.f32 %v6526_v23, %v3837_v46 }
 0x397   : > { %v5053_v61 = vpop.f32.mrf.mxu0  ;;  %v3937_v10 = vunpack.c.h.bf16 %v5135_v11 }
 0x398   : > { %4152 = vst.msk [vmem:[%s6538_s18 + $0x2c] sm:$0xf] %vm4140_vm2, %v4488_v47  ;;  %v4486_v62 = vpack.c.bf16 %v3989_v13, %v3989_v13  ;;  %v3994_v29 = vmax.f32 %v3962_v27, 0.0  ;;  %v3960_v25 = vadd.f32 %v3928_v26, %v3838_v52  ;;  %v3849_v51 = vadd.f32 %v5053_v61, %v6526_v23  ;;  %v5136_v47 = vld [vmem:[%s5212_s10 + $0x68] sm:$0xff]  }
 0x399   : > { %v3840_v5 = vpop.f32.mrf.mxu0  ;;  %v3942_v13 = vunpack.c.l.bf16 %v5136_v47 }
 0x39a   : > { %4150 = vst.msk [vmem:[%s6538_s18 + $0x24] sm:$0xf] %vm4140_vm2, %v4486_v62  ;;  %v4491_v59 = vpack.c.bf16 %v3994_v29, %v3994_v29  ;;  %v3992_v35 = vmax.f32 %v3960_v25, 0.0  ;;  %v3963_v42 = vadd.f32 %v3931_v32, %v3849_v51  ;;  %v3841_v33 = vadd.f32 %v6526_v23, %v3840_v5  ;;  %v5137_v29 = vld [vmem:[%s5212_s10 + $0x60] sm:$0xff]  }
 0x39b   : > { %v5056_v20 = vpop.f32.mrf.mxu0  ;;  %v3940_v25 = vunpack.c.l.bf16 %v5137_v29 }
 0x39c   : > { %4155 = vst.msk [vmem:[%s6538_s18 + $0x38] sm:$0xf] %vm4140_vm2, %v4491_v59  ;;  %v4489_v63 = vpack.c.bf16 %v3992_v35, %v3992_v35  ;;  %v3995_v34 = vmax.f32 %v3963_v42, 0.0  ;;  %v3961_v57 = vadd.f32 %v3929_v54, %v3841_v33  ;;  %v3862_v2 = vadd.f32 %v5056_v20, %v6526_v23 }
 0x39d   : > { %v3853_v24 = vpop.f32.mrf.mxu0  ;;  %v3943_v35 = vunpack.c.h.bf16 %v5136_v47 }
 0x39e   : > { %4153 = vst.msk [vmem:[%s6538_s18 + $0x30] sm:$0xf] %vm4140_vm2, %v4489_v63  ;;  %v4492_v39 = vpack.c.bf16 %v3995_v34, %v3995_v34  ;;  %v3993_v37 = vmax.f32 %v3961_v57, 0.0  ;;  %v3966_v45 = vadd.f32 %v3934_v18, %v3862_v2  ;;  %v3854_v16 = vadd.f32 %v6526_v23, %v3853_v24 }
 0x39f   : > { %v5057_v8 = vpop.f32.mrf.mxu0  ;;  %v3941_v63 = vunpack.c.h.bf16 %v5137_v29 }
 0x3a0   : > { %4156 = vst.msk [vmem:[%s6538_s18 + $0x3c] sm:$0xf] %vm4140_vm2, %v4492_v39  ;;  %v4490_v6 = vpack.c.bf16 %v3993_v37, %v3993_v37  ;;  %v3998_v14 = vmax.f32 %v3966_v45, 0.0  ;;  %v3964_v40 = vadd.f32 %v3932_v53, %v3854_v16  ;;  %v3865_v41 = vadd.f32 %v5057_v8, %v6526_v23  ;;  %v5138_v39 = vld [vmem:[%s5212_s10 + $0x78] sm:$0xff]  }
 0x3a1   : > { %v3856_v44 = vpop.f32.mrf.mxu0  ;;  %v3946_v37 = vunpack.c.l.bf16 %v5138_v39 }
 0x3a2   : > { %4154 = vst.msk [vmem:[%s6538_s18 + $0x34] sm:$0xf] %vm4140_vm2, %v4490_v6  ;;  %v4495_v55 = vpack.c.bf16 %v3998_v14, %v3998_v14  ;;  %v3996_v4 = vmax.f32 %v3964_v40, 0.0  ;;  %v3967_v48 = vadd.f32 %v3935_v17, %v3865_v41  ;;  %v3857_v58 = vadd.f32 %v6526_v23, %v3856_v44  ;;  %v5139_v14 = vld [vmem:[%s5212_s10 + $0x70] sm:$0xff]  }
 0x3a3   : > { %v5060_v43 = vpop.f32.mrf.mxu0  ;;  %v3944_v40 = vunpack.c.l.bf16 %v5139_v14 }
 0x3a4   : > { %4159 = vst.msk [vmem:[%s6538_s18 + $0x48] sm:$0xf] %vm4140_vm2, %v4495_v55  ;;  %v4493_v50 = vpack.c.bf16 %v3996_v4, %v3996_v4  ;;  %v3999_v49 = vmax.f32 %v3967_v48, 0.0  ;;  %v3965_v56 = vadd.f32 %v3933_v15, %v3857_v58  ;;  %v3878_v3 = vadd.f32 %v5060_v43, %v6526_v23 }
 0x3a5   : > { %v3869_v60 = vpop.f32.mrf.mxu0  ;;  %v3947_v4 = vunpack.c.h.bf16 %v5138_v39 }
 0x3a6   : > { %4157 = vst.msk [vmem:[%s6538_s18 + $0x40] sm:$0xf] %vm4140_vm2, %v4493_v50  ;;  %v4496_v21 = vpack.c.bf16 %v3999_v49, %v3999_v49  ;;  %v3997_v19 = vmax.f32 %v3965_v56, 0.0  ;;  %v3970_v12 = vadd.f32 %v3938_v31, %v3878_v3  ;;  %v3870_v36 = vadd.f32 %v6526_v23, %v3869_v60 }
 0x3a7   : > { %v5061_v26 = vpop.f32.mrf.mxu0  ;;  %v3945_v50 = vunpack.c.h.bf16 %v5139_v14 }
 0x3a8   : > { %4160 = vst.msk [vmem:[%s6538_s18 + $0x4c] sm:$0xf] %vm4140_vm2, %v4496_v21  ;;  %v4494_v0 = vpack.c.bf16 %v3997_v19, %v3997_v19  ;;  %v4002_v28 = vmax.f32 %v3970_v12, 0.0  ;;  %v3968_v38 = vadd.f32 %v3936_v22, %v3870_v36  ;;  %v3881_v46 = vadd.f32 %v5061_v26, %v6526_v23 }
 0x3a9   : > { %v3872_v32 = vpop.f32.mrf.mxu0 }
 0x3aa   : > { %4158 = vst.msk [vmem:[%s6538_s18 + $0x44] sm:$0xf] %vm4140_vm2, %v4494_v0  ;;  %v4499_v27 = vpack.c.bf16 %v4002_v28, %v4002_v28  ;;  %v4000_v52 = vmax.f32 %v3968_v38, 0.0  ;;  %v3971_v61 = vadd.f32 %v3939_v9, %v3881_v46  ;;  %v3873_v54 = vadd.f32 %v6526_v23, %v3872_v32 }
 0x3ab   : > { %v5064_v62 = vpop.f32.mrf.mxu0 }
 0x3ac   : > { %4163 = vst.msk [vmem:[%s6538_s18 + $0x58] sm:$0xf] %vm4140_vm2, %v4499_v27  ;;  %v4497_v51 = vpack.c.bf16 %v4000_v52, %v4000_v52  ;;  %v4003_v5 = vmax.f32 %v3971_v61, 0.0  ;;  %v3969_v30 = vadd.f32 %v3937_v10, %v3873_v54  ;;  %v3894_v18 = vadd.f32 %v5064_v62, %v6526_v23 }
 0x3ad   : > { %v3885_v59 = vpop.f32.mrf.mxu0 }
 0x3ae   : > { %4161 = vst.msk [vmem:[%s6538_s18 + $0x50] sm:$0xf] %vm4140_vm2, %v4497_v51  ;;  %v4500_v42 = vpack.c.bf16 %v4003_v5, %v4003_v5  ;;  %v4001_v33 = vmax.f32 %v3969_v30, 0.0  ;;  %v3974_v1 = vadd.f32 %v3942_v13, %v3894_v18  ;;  %v3886_v53 = vadd.f32 %v6526_v23, %v3885_v59 }
 0x3af   : > { %v5065_v20 = vpop.f32.mrf.mxu0 }
 0x3b0   : > { %4164 = vst.msk [vmem:[%s6538_s18 + $0x5c] sm:$0xf] %vm4140_vm2, %v4500_v42  ;;  %v4498_v34 = vpack.c.bf16 %v4001_v33, %v4001_v33  ;;  %v4006_v57 = vmax.f32 %v3974_v1, 0.0  ;;  %v3972_v2 = vadd.f32 %v3940_v25, %v3886_v53  ;;  %v3897_v24 = vadd.f32 %v5065_v20, %v6526_v23 }
 0x3b1   : > { %v3888_v17 = vpop.f32.mrf.mxu0 }
 0x3b2   : > { %4162 = vst.msk [vmem:[%s6538_s18 + $0x54] sm:$0xf] %vm4140_vm2, %v4498_v34  ;;  %v4503_v45 = vpack.c.bf16 %v4006_v57, %v4006_v57  ;;  %v4004_v16 = vmax.f32 %v3972_v2, 0.0  ;;  %v3975_v15 = vadd.f32 %v3943_v35, %v3897_v24  ;;  %v3889_v8 = vadd.f32 %v6526_v23, %v3888_v17 }
 0x3b3   : > { %v5068_v6 = vpop.f32.mrf.mxu0 }
 0x3b4   : > { %4167 = vst.msk [vmem:[%s6538_s18 + $0x68] sm:$0xf] %vm4140_vm2, %v4503_v45  ;;  %v4501_v41 = vpack.c.bf16 %v4004_v16, %v4004_v16  ;;  %v4007_v44 = vmax.f32 %v3975_v15, 0.0  ;;  %v3973_v7 = vadd.f32 %v3941_v63, %v3889_v8  ;;  %v3910_v31 = vadd.f32 %v5068_v6, %v6526_v23 }
 0x3b5   : > { %v3901_v55 = vpop.f32.mrf.mxu0 }
 0x3b6   : > { %4165 = vst.msk [vmem:[%s6538_s18 + $0x60] sm:$0xf] %vm4140_vm2, %v4501_v41  ;;  %v4504_v48 = vpack.c.bf16 %v4007_v44, %v4007_v44  ;;  %v4005_v58 = vmax.f32 %v3973_v7, 0.0  ;;  %v3978_v43 = vadd.f32 %v3946_v37, %v3910_v31  ;;  %v3902_v11 = vadd.f32 %v6526_v23, %v3901_v55 }
 0x3b7   : > { %v5069_v22 = vpop.f32.mrf.mxu0 }
 0x3b8   : > { %4168 = vst.msk [vmem:[%s6538_s18 + $0x6c] sm:$0xf] %vm4140_vm2, %v4504_v48  ;;  %v4502_v49 = vpack.c.bf16 %v4005_v58, %v4005_v58  ;;  %v4010_v56 = vmax.f32 %v3978_v43, 0.0  ;;  %v3976_v3 = vadd.f32 %v3944_v40, %v3902_v11  ;;  %v3913_v60 = vadd.f32 %v5069_v22, %v6526_v23 }
 0x3b9   : > { %v3904_v9 = vpop.f32.mrf.mxu0 }
 0x3ba   : > { %4166 = vst.msk [vmem:[%s6538_s18 + $0x64] sm:$0xf] %vm4140_vm2, %v4502_v49  ;;  %v4507_v21 = vpack.c.bf16 %v4010_v56, %v4010_v56  ;;  %v4008_v19 = vmax.f32 %v3976_v3, 0.0  ;;  %v3979_v12 = vadd.f32 %v3947_v4, %v3913_v60  ;;  %v3905_v36 = vadd.f32 %v6526_v23, %v3904_v9 }
 0x3bc   : > { %4171 = vst.msk [vmem:[%s6538_s18 + $0x78] sm:$0xf] %vm4140_vm2, %v4507_v21  ;;  %v4505_v26 = vpack.c.bf16 %v4008_v19, %v4008_v19  ;;  %v4011_v10 = vmax.f32 %v3979_v12, 0.0  ;;  %v3977_v0 = vadd.f32 %v3945_v50, %v3905_v36 }
 0x3be   : > { %4169 = vst.msk [vmem:[%s6538_s18 + $0x70] sm:$0xf] %vm4140_vm2, %v4505_v26  ;;  %v4508_v28 = vpack.c.bf16 %v4011_v10, %v4011_v10  ;;  %v4009_v38 = vmax.f32 %v3977_v0, 0.0 }
 0x3c0   : > { %4172 = vst.msk [vmem:[%s6538_s18 + $0x7c] sm:$0xf] %vm4140_vm2, %v4508_v28  ;;  %v4506_v46 = vpack.c.bf16 %v4009_v38, %v4009_v38 }
 0x3c2   : > { %4170 = vst.msk [vmem:[%s6538_s18 + $0x74] sm:$0xf] %vm4140_vm2, %v4506_v46 }
 0x3c3 PF: > { %s17_s24 = sadd.s32 1, %s5146_s24  }
 0x3c4   : > { %p14_p4 = scmp.ge.s32.totalorder %s17_s24, 4  }
 0x3c6   :  { %16 = sbr.rel (!%p14_p4) target bundleno = 1 (0x1), region = 86 }

</bundles_post_ra>
